<compile_context>
chip_gen: v6e
topology: v6e:2x2x1
jax: 0.10.0
libtpu: 0.0.40
codegen_flags: <defaults>
</compile_context>

<pallas_src>
import functools
import math

import jax
import jax.numpy as jnp
from jax.experimental import pallas as pl
from jax.experimental.pallas import tpu as pltpu

# ----- tiny synthetic BERT config -----
VOCAB = 100
MAX_POS = 16
TYPE_VOCAB = 2
HIDDEN = 32
NUM_LAYERS = 2
NUM_HEADS = 4
HEAD_DIM = HIDDEN // NUM_HEADS
INTERMEDIATE = 64
LN_EPS = 1e-12
MAXW = max(3 * HIDDEN, INTERMEDIATE)   # lane width of the packed per-layer params


def _layer_norm(t, g, b):
    # Two-pass LayerNorm (variance on x - mean) for numerical parity with HF.
    mu = t.mean(axis=-1, keepdims=True)
    xc = t - mu
    var = (xc * xc).mean(axis=-1, keepdims=True)
    return xc * jax.lax.rsqrt(var + LN_EPS) * g + b


# ----- fused forward kernel (grid axis = encoder layer) -----

def idiom_forward_kernel(
        emb_ref, bias_ref,                       # resident activations / mask bias
        wqkv_ref, wao_ref, wfi_ref, wfo_ref,     # per-layer bf16 weights (streamed)
        small_ref,                               # per-layer packed f32 biases / LN params
        poolw_ref, misc_ref,                     # pooler weight + packed global params
        out_ref,                                 # [B, 1] logits
        h_ref,                                   # VMEM scratch, resident across layers
        *, batch, seq):
    f32 = jnp.float32
    bf16 = jnp.bfloat16
    l = pl.program_id(0)

    # ---- embedding LayerNorm, once (layer 0 only) ----
    @pl.when(l == 0)
    def _():
        h_ref[...] = _layer_norm(emb_ref[...], misc_ref[0:1, :], misc_ref[1:2, :])

    h = h_ref[...]                                    # [B*S, H] f32
    bias = bias_ref[...][:, None, :]                  # [B, 1, S] additive mask bias
    scale = 1.0 / math.sqrt(HEAD_DIM)

    # ---- fused QKV projection: one [H, 3H]-wide bf16 matmul ----
    qkv = (jnp.dot(h.astype(bf16), wqkv_ref[...], preferred_element_type=f32)
           + small_ref[0:1, :])                       # [B*S, 3H]
    qkv3 = qkv.reshape(batch, seq, 3 * HIDDEN)

    # ---- per-head attention (score/context only); contexts laid side-by-side ----
    ctx_heads = []
    for hh in range(NUM_HEADS):                       # static unroll (NUM_HEADS tiny)
        off = hh * HEAD_DIM
        qh = qkv3[:, :, off:off + HEAD_DIM]
        kh = qkv3[:, :, HIDDEN + off:HIDDEN + off + HEAD_DIM]
        vh = qkv3[:, :, 2 * HIDDEN + off:2 * HIDDEN + off + HEAD_DIM]
        s = jnp.einsum('bqd,bkd->bqk', qh.astype(bf16), kh.astype(bf16),
                       preferred_element_type=f32) * scale + bias
        s = s - s.max(axis=-1, keepdims=True)
        p = jnp.exp(s)
        p = p * pl.reciprocal(p.sum(axis=-1, keepdims=True), approx=True)
        ch = jnp.einsum('bqk,bkd->bqd', p.astype(bf16), vh.astype(bf16),
                        preferred_element_type=f32)
        ctx_heads.append(ch.reshape(batch * seq, HEAD_DIM))
    ctx = jnp.concatenate(ctx_heads, axis=-1)         # [B*S, H], heads lane-concatenated

    # ---- single full-width attention output projection + post-LN ----
    attn = (jnp.dot(ctx.astype(bf16), wao_ref[...], preferred_element_type=f32)
            + small_ref[2:3, :HIDDEN])
    h1 = _layer_norm(h + attn, small_ref[3:4, :HIDDEN], small_ref[4:5, :HIDDEN])

    # ---- feed-forward ----
    # TODO(synk): HF BERT uses exact erf-GELU; tanh approximation used here (lowers cleanly).
    inter = jax.nn.gelu(
        jnp.dot(h1.astype(bf16), wfi_ref[...], preferred_element_type=f32)
        + small_ref[1:2, :INTERMEDIATE],
        approximate=True)
    ffn = (jnp.dot(inter.astype(bf16), wfo_ref[...], preferred_element_type=f32)
           + small_ref[5:6, :HIDDEN])
    h_new = _layer_norm(h1 + ffn, small_ref[6:7, :HIDDEN], small_ref[7:8, :HIDDEN])
    h_ref[...] = h_new                                # carried to the next layer

    # ---- pooler + classification head, only at the last layer ----
    @pl.when(l == NUM_LAYERS - 1)
    def _():
        cls = h_new.reshape(batch, seq, HIDDEN)[:, 0, :]          # [B, H]
        pooled = jnp.tanh(
            jnp.dot(cls.astype(bf16), poolw_ref[...], preferred_element_type=f32)
            + misc_ref[2:3, :])
        # TODO(synk): Dropout(p=0.4) is identity at inference; train-mode masking not implemented.
        logit = jnp.sum(pooled * misc_ref[3:4, :], axis=-1, keepdims=True)
        out_ref[...] = logit + misc_ref[4:5, 0:1]


# ----- wrapper -----

@jax.jit
def idiom_classifier_forward(params, input_ids, attention_mask):
    B, S = input_ids.shape
    L = NUM_LAYERS
    f32, bf16 = jnp.float32, jnp.bfloat16

    # Embedding gathers are glue (plain JAX); everything else runs in one kernel.
    word = params['word_emb'][input_ids]                      # [B, S, H]
    pos = params['pos_emb'][:S][None, :, :]                   # [1, S, H]
    typ = params['type_emb'][0][None, None, :]                # token_type_ids = 0
    emb = (word + pos + typ).reshape(B * S, HIDDEN).astype(f32)
    mask_bias = (1.0 - attention_mask.astype(f32)) * -10000.0  # [B, S] (hoisted)

    layers = params['layers']

    def stack(name):
        return jnp.stack([layers[i][name] for i in range(L)])

    # Fused QKV weights + bf16 weight stacks (streamed per layer over the grid).
    w_qkv = jnp.concatenate([stack('wq'), stack('wk'), stack('wv')],
                            axis=-1).astype(bf16)             # [L, H, 3H]
    w_ao = stack('wo').astype(bf16)                           # [L, H, H]
    w_fi = stack('wi').astype(bf16)                           # [L, H, I]
    w_fo = stack('wo2').astype(bf16)                          # [L, I, H]

    # Pack all tiny per-layer params into ONE f32 array (one DMA instead of ~14).
    small = jnp.zeros((L, 8, MAXW), f32)
    b_qkv = jnp.concatenate([stack('bq'), stack('bk'), stack('bv')], axis=-1)
    small = small.at[:, 0:1, :3 * HIDDEN].set(b_qkv)
    small = small.at[:, 1:2, :INTERMEDIATE].set(stack('bi'))
    small = small.at[:, 2:3, :HIDDEN].set(stack('bo'))
    small = small.at[:, 3:4, :HIDDEN].set(stack('ln1_g'))
    small = small.at[:, 4:5, :HIDDEN].set(stack('ln1_b'))
    small = small.at[:, 5:6, :HIDDEN].set(stack('bo2'))
    small = small.at[:, 6:7, :HIDDEN].set(stack('ln2_g'))
    small = small.at[:, 7:8, :HIDDEN].set(stack('ln2_b'))

    pooler_w = params['pooler_w'].astype(bf16)                # [H, H]

    # Packed global small params: emb-LN, pooler bias, classifier head.
    misc = jnp.zeros((5, HIDDEN), f32)
    misc = misc.at[0].set(params['emb_ln_g'][0])
    misc = misc.at[1].set(params['emb_ln_b'][0])
    misc = misc.at[2].set(params['pooler_b'][0])
    misc = misc.at[3].set(params['out_w'][:, 0])              # Linear(H,1) weight as a row
    misc = misc.at[4].set(jnp.full((HIDDEN,), params['out_b'][0, 0]))

    grid_spec = pltpu.PrefetchScalarGridSpec(
        num_scalar_prefetch=0,
        grid=(L,),
        in_specs=[
            pl.BlockSpec((B * S, HIDDEN), lambda l: (0, 0)),              # emb (resident)
            pl.BlockSpec((B, S), lambda l: (0, 0)),                       # mask bias (resident)
            pl.BlockSpec((None, HIDDEN, 3 * HIDDEN), lambda l: (l, 0, 0)),  # W_qkv[l]
            pl.BlockSpec((None, HIDDEN, HIDDEN), lambda l: (l, 0, 0)),      # W_attn_out[l]
            pl.BlockSpec((None, HIDDEN, INTERMEDIATE), lambda l: (l, 0, 0)),  # W_ffn_in[l]
            pl.BlockSpec((None, INTERMEDIATE, HIDDEN), lambda l: (l, 0, 0)),  # W_ffn_out[l]
            pl.BlockSpec((None, 8, MAXW), lambda l: (l, 0, 0)),             # packed biases/LN[l]
            pl.BlockSpec((HIDDEN, HIDDEN), lambda l: (0, 0)),             # pooler weight
            pl.BlockSpec((5, HIDDEN), lambda l: (0, 0)),                  # packed globals
        ],
        out_specs=pl.BlockSpec((B, 1), lambda l: (0, 0)),
        scratch_shapes=[pltpu.VMEM((B * S, HIDDEN), f32)],                # resident h
    )

    return pl.pallas_call(
        functools.partial(idiom_forward_kernel, batch=B, seq=S),
        out_shape=jax.ShapeDtypeStruct((B, 1), f32),
        grid_spec=grid_spec,
        compiler_params=pltpu.CompilerParams(
            dimension_semantics=("arbitrary",)),
    )(emb, mask_bias, w_qkv, w_ao, w_fi, w_fo, small, pooler_w, misc)  # [B, 1]


# ----- deterministic synthetic parameters -----

def init_params(key):
    keys = iter(jax.random.split(key, 64))

    def w(shape, scale=0.02):
        return jax.random.normal(next(keys), shape, jnp.float32) * scale

    params = dict(
        word_emb=w((VOCAB, HIDDEN)),
        pos_emb=w((MAX_POS, HIDDEN)),
        type_emb=w((TYPE_VOCAB, HIDDEN)),
        emb_ln_g=jnp.ones((1, HIDDEN), jnp.float32),
        emb_ln_b=jnp.zeros((1, HIDDEN), jnp.float32),
        pooler_w=w((HIDDEN, HIDDEN)),
        pooler_b=jnp.zeros((1, HIDDEN), jnp.float32),
        out_w=w((HIDDEN, 1)),            # torch Linear(H, 1) weight, transposed for x @ W
        out_b=jnp.zeros((1, 1), jnp.float32),
        layers=[],
    )
    for _ in range(NUM_LAYERS):
        params['layers'].append(dict(
            wq=w((HIDDEN, HIDDEN)), bq=jnp.zeros((1, HIDDEN), jnp.float32),
            wk=w((HIDDEN, HIDDEN)), bk=jnp.zeros((1, HIDDEN), jnp.float32),
            wv=w((HIDDEN, HIDDEN)), bv=jnp.zeros((1, HIDDEN), jnp.float32),
            wo=w((HIDDEN, HIDDEN)), bo=jnp.zeros((1, HIDDEN), jnp.float32),
            ln1_g=jnp.ones((1, HIDDEN), jnp.float32),
            ln1_b=jnp.zeros((1, HIDDEN), jnp.float32),
            wi=w((HIDDEN, INTERMEDIATE)), bi=jnp.zeros((1, INTERMEDIATE), jnp.float32),
            wo2=w((INTERMEDIATE, HIDDEN)), bo2=jnp.zeros((1, HIDDEN), jnp.float32),
            ln2_g=jnp.ones((1, HIDDEN), jnp.float32),
            ln2_b=jnp.zeros((1, HIDDEN), jnp.float32),
        ))
    return params


if __name__ == "__main__":
    key = jax.random.PRNGKey(0)
    pkey, ikey = jax.random.split(key)
    params = init_params(pkey)

    B, S = 2, 8
    input_ids = jax.random.randint(ikey, (B, S), 0, VOCAB)
    attention_mask = jnp.ones((B, S), jnp.float32).at[1, 6:].set(0.0)  # pad last 2 of seq 1

    logits = idiom_classifier_forward(params, input_ids, attention_mask)
    jax.block_until_ready(logits)
    assert logits.shape == (B, 1) and logits.dtype == jnp.float32
    assert bool(jnp.all(jnp.isfinite(logits)))
    print("KERNEL_OK")
</pallas_src>

<mosaic_0001>
module attributes {stable_mosaic.version = 11 : i64} {
  func.func @idiom_forward_kernel(%arg0: i32, %arg1: memref<16x32xf32, #tpu.memory_space<vmem>>, %arg2: memref<2x8xf32, #tpu.memory_space<vmem>>, %arg3: memref<1x32x96xbf16, #tpu.memory_space<vmem>>, %arg4: memref<1x32x32xbf16, #tpu.memory_space<vmem>>, %arg5: memref<1x32x64xbf16, #tpu.memory_space<vmem>>, %arg6: memref<1x64x32xbf16, #tpu.memory_space<vmem>>, %arg7: memref<1x8x96xf32, #tpu.memory_space<vmem>>, %arg8: memref<32x32xbf16, #tpu.memory_space<vmem>>, %arg9: memref<5x32xf32, #tpu.memory_space<vmem>>, %arg10: memref<2x1xf32, #tpu.memory_space<vmem>>, %arg11: memref<16x32xf32, #tpu.memory_space<vmem>>) attributes {dimension_semantics = [#tpu.dimension_semantics<arbitrary>], iteration_bounds = array<i64: 2>, scalar_prefetch = 0 : i64, scratch_operands = 1 : i64, tpu.core_type = #tpu.core_type<tc>, window_params = [{pipeline_mode = #tpu.pipeline_mode<synchronous>, transform_indices = @transform_0, window_bounds = array<i64: 16, 32>}, {pipeline_mode = #tpu.pipeline_mode<synchronous>, transform_indices = @transform_1, window_bounds = array<i64: 2, 8>}, {transform_indices = @transform_2, window_bounds = array<i64: 1, 32, 96>}, {transform_indices = @transform_3, window_bounds = array<i64: 1, 32, 32>}, {transform_indices = @transform_4, window_bounds = array<i64: 1, 32, 64>}, {transform_indices = @transform_5, window_bounds = array<i64: 1, 64, 32>}, {transform_indices = @transform_6, window_bounds = array<i64: 1, 8, 96>}, {pipeline_mode = #tpu.pipeline_mode<synchronous>, transform_indices = @transform_7, window_bounds = array<i64: 32, 32>}, {pipeline_mode = #tpu.pipeline_mode<synchronous>, transform_indices = @transform_8, window_bounds = array<i64: 5, 32>}, {pipeline_mode = #tpu.pipeline_mode<synchronous>, transform_indices = @transform_9, window_bounds = array<i64: 2, 1>}]} {
    %c0_i32 = arith.constant 0 : i32
    %0 = arith.cmpi eq, %arg0, %c0_i32 : i32
    %1 = arith.extui %0 : i1 to i32
    %c0_i32_0 = arith.constant 0 : i32
    %2 = arith.cmpi ne, %1, %c0_i32_0 : i32
    scf.if %2 {
      %c0_73 = arith.constant 0 : index
      %c0_74 = arith.constant 0 : index
      %203 = vector.load %arg1[%c0_73, %c0_74] : memref<16x32xf32, #tpu.memory_space<vmem>>, vector<16x32xf32>
      %c0_75 = arith.constant 0 : index
      %c0_76 = arith.constant 0 : index
      %204 = vector.load %arg9[%c0_75, %c0_76] : memref<5x32xf32, #tpu.memory_space<vmem>>, vector<1x32xf32>
      %c1_77 = arith.constant 1 : index
      %c0_78 = arith.constant 0 : index
      %205 = vector.load %arg9[%c1_77, %c0_78] : memref<5x32xf32, #tpu.memory_space<vmem>>, vector<1x32xf32>
      %cst_79 = arith.constant dense<0.000000e+00> : vector<16xf32>
      %206 = vector.multi_reduction <add>, %203, %cst_79 [1] : vector<16x32xf32> to vector<16xf32>
      %207 = vector.shape_cast %206 : vector<16xf32> to vector<16x1xf32>
      %cst_80 = arith.constant 3.200000e+01 : f32
      %208 = vector.broadcast %cst_80 : f32 to vector<16x1xf32>
      %209 = arith.divf %207, %208 : vector<16x1xf32>
      %210 = vector.broadcast %209 : vector<16x1xf32> to vector<16x32xf32>
      %211 = arith.subf %203, %210 : vector<16x32xf32>
      %212 = arith.mulf %211, %211 : vector<16x32xf32>
      %cst_81 = arith.constant dense<0.000000e+00> : vector<16xf32>
      %213 = vector.multi_reduction <add>, %212, %cst_81 [1] : vector<16x32xf32> to vector<16xf32>
      %214 = vector.shape_cast %213 : vector<16xf32> to vector<16x1xf32>
      %cst_82 = arith.constant 3.200000e+01 : f32
      %215 = vector.broadcast %cst_82 : f32 to vector<16x1xf32>
      %216 = arith.divf %214, %215 : vector<16x1xf32>
      %cst_83 = arith.constant 9.99999996E-13 : f32
      %217 = vector.broadcast %cst_83 : f32 to vector<16x1xf32>
      %218 = arith.addf %216, %217 : vector<16x1xf32>
      %219 = math.rsqrt %218 : vector<16x1xf32>
      %220 = vector.broadcast %219 : vector<16x1xf32> to vector<16x32xf32>
      %221 = arith.mulf %211, %220 : vector<16x32xf32>
      %222 = vector.broadcast %204 : vector<1x32xf32> to vector<16x32xf32>
      %223 = arith.mulf %221, %222 : vector<16x32xf32>
      %224 = vector.broadcast %205 : vector<1x32xf32> to vector<16x32xf32>
      %225 = arith.addf %223, %224 : vector<16x32xf32>
      %c0_84 = arith.constant 0 : index
      %c0_85 = arith.constant 0 : index
      %226 = vector.load %arg11[%c0_84, %c0_85] : memref<16x32xf32, #tpu.memory_space<vmem>>, vector<16x32xf32>
      tpu.vector_store %arg11[%c0_84, %c0_85], %225 {strides = array<i32>} : memref<16x32xf32, #tpu.memory_space<vmem>>, vector<16x32xf32>,
    } else {
    }
    %c0 = arith.constant 0 : index
    %c0_1 = arith.constant 0 : index
    %3 = vector.load %arg11[%c0, %c0_1] : memref<16x32xf32, #tpu.memory_space<vmem>>, vector<16x32xf32>
    %c0_2 = arith.constant 0 : index
    %c0_3 = arith.constant 0 : index
    %4 = vector.load %arg2[%c0_2, %c0_3] : memref<2x8xf32, #tpu.memory_space<vmem>>, vector<2x8xf32>
    %5 = vector.shape_cast %4 : vector<2x8xf32> to vector<2x1x8xf32>
    %6 = arith.truncf %3 : vector<16x32xf32> to vector<16x32xbf16>
    %c0_4 = arith.constant 0 : index
    %c0_5 = arith.constant 0 : index
    %c0_6 = arith.constant 0 : index
    %7 = vector.load %arg3[%c0_4, %c0_5, %c0_6] : memref<1x32x96xbf16, #tpu.memory_space<vmem>>, vector<1x32x96xbf16>
    %8 = vector.shape_cast %7 : vector<1x32x96xbf16> to vector<32x96xbf16>
    %cst = arith.constant dense<0.000000e+00> : vector<16x96xf32>
    %9 = tpu.matmul %6, %8, %cst {dimension_numbers = #tpu.dot_dimension_numbers<[1], [0], [0], [1], [0, 0, 1, 1], [], []>} : vector<16x32xbf16>, vector<32x96xbf16>, vector<16x96xf32> -> vector<16x96xf32>
    %c0_7 = arith.constant 0 : index
    %c0_8 = arith.constant 0 : index
    %c0_9 = arith.constant 0 : index
    %10 = vector.load %arg7[%c0_7, %c0_8, %c0_9] : memref<1x8x96xf32, #tpu.memory_space<vmem>>, vector<1x1x96xf32>
    %11 = vector.shape_cast %10 : vector<1x1x96xf32> to vector<1x96xf32>
    %12 = vector.broadcast %11 : vector<1x96xf32> to vector<16x96xf32>
    %13 = arith.addf %9, %12 : vector<16x96xf32>
    %14 = vector.shape_cast %13 : vector<16x96xf32> to vector<2x8x96xf32>
    %15 = vector.extract_strided_slice %14 {offsets = [0, 0, 0], sizes = [2, 8, 8], strides = [1, 1, 1]} : vector<2x8x96xf32> to vector<2x8x8xf32>
    %16 = vector.extract_strided_slice %14 {offsets = [0, 0, 32], sizes = [2, 8, 8], strides = [1, 1, 1]} : vector<2x8x96xf32> to vector<2x8x8xf32>
    %17 = vector.extract_strided_slice %14 {offsets = [0, 0, 64], sizes = [2, 8, 8], strides = [1, 1, 1]} : vector<2x8x96xf32> to vector<2x8x8xf32>
    %18 = arith.truncf %15 : vector<2x8x8xf32> to vector<2x8x8xbf16>
    %19 = arith.truncf %16 : vector<2x8x8xf32> to vector<2x8x8xbf16>
    "tpu.trace_start"() <{level = 10 : i32, message = "bqd,bkd->bqk"}> : () -> ()
    %cst_10 = arith.constant dense<0.000000e+00> : vector<2x8x8xf32>
    %20 = tpu.matmul %18, %19, %cst_10 {dimension_numbers = #tpu.dot_dimension_numbers<[2], [2], [1], [1], [0, 0, 0, 1, 1, 1], [0], [0]>} : vector<2x8x8xbf16>, vector<2x8x8xbf16>, vector<2x8x8xf32> -> vector<2x8x8xf32>
    "tpu.trace_stop"() : () -> ()
    %cst_11 = arith.constant 0.353553385 : f32
    %21 = vector.broadcast %cst_11 : f32 to vector<2x8x8xf32>
    %22 = arith.mulf %20, %21 : vector<2x8x8xf32>
    %23 = vector.broadcast %5 : vector<2x1x8xf32> to vector<2x8x8xf32>
    %24 = arith.addf %22, %23 : vector<2x8x8xf32>
    %cst_12 = arith.constant dense<0xFF800000> : vector<2x8xf32>
    %25 = vector.multi_reduction <maximumf>, %24, %cst_12 [2] : vector<2x8x8xf32> to vector<2x8xf32>
    %26 = vector.shape_cast %25 : vector<2x8xf32> to vector<2x8x1xf32>
    %27 = vector.broadcast %26 : vector<2x8x1xf32> to vector<2x8x8xf32>
    %28 = arith.subf %24, %27 : vector<2x8x8xf32>
    %29 = math.exp %28 : vector<2x8x8xf32>
    %cst_13 = arith.constant dense<0.000000e+00> : vector<2x8xf32>
    %30 = vector.multi_reduction <add>, %29, %cst_13 [2] : vector<2x8x8xf32> to vector<2x8xf32>
    %31 = vector.shape_cast %30 : vector<2x8xf32> to vector<2x8x1xf32>
    %32 = tpu.reciprocal %31 {approx = true} : vector<2x8x1xf32> -> vector<2x8x1xf32>
    %33 = vector.broadcast %32 : vector<2x8x1xf32> to vector<2x8x8xf32>
    %34 = arith.mulf %29, %33 : vector<2x8x8xf32>
    %35 = arith.truncf %34 : vector<2x8x8xf32> to vector<2x8x8xbf16>
    %36 = arith.truncf %17 : vector<2x8x8xf32> to vector<2x8x8xbf16>
    "tpu.trace_start"() <{level = 10 : i32, message = "bqk,bkd->bqd"}> : () -> ()
    %cst_14 = arith.constant dense<0.000000e+00> : vector<2x8x8xf32>
    %37 = tpu.matmul %35, %36, %cst_14 {dimension_numbers = #tpu.dot_dimension_numbers<[2], [1], [1], [2], [0, 0, 0, 1, 1, 2], [0], [0]>} : vector<2x8x8xbf16>, vector<2x8x8xbf16>, vector<2x8x8xf32> -> vector<2x8x8xf32>
    "tpu.trace_stop"() : () -> ()
    %38 = vector.shape_cast %37 : vector<2x8x8xf32> to vector<16x8xf32>
    %39 = vector.extract_strided_slice %14 {offsets = [0, 0, 8], sizes = [2, 8, 8], strides = [1, 1, 1]} : vector<2x8x96xf32> to vector<2x8x8xf32>
    %40 = vector.extract_strided_slice %14 {offsets = [0, 0, 40], sizes = [2, 8, 8], strides = [1, 1, 1]} : vector<2x8x96xf32> to vector<2x8x8xf32>
    %41 = vector.extract_strided_slice %14 {offsets = [0, 0, 72], sizes = [2, 8, 8], strides = [1, 1, 1]} : vector<2x8x96xf32> to vector<2x8x8xf32>
    %42 = arith.truncf %39 : vector<2x8x8xf32> to vector<2x8x8xbf16>
    %43 = arith.truncf %40 : vector<2x8x8xf32> to vector<2x8x8xbf16>
    "tpu.trace_start"() <{level = 10 : i32, message = "bqd,bkd->bqk"}> : () -> ()
    %cst_15 = arith.constant dense<0.000000e+00> : vector<2x8x8xf32>
    %44 = tpu.matmul %42, %43, %cst_15 {dimension_numbers = #tpu.dot_dimension_numbers<[2], [2], [1], [1], [0, 0, 0, 1, 1, 1], [0], [0]>} : vector<2x8x8xbf16>, vector<2x8x8xbf16>, vector<2x8x8xf32> -> vector<2x8x8xf32>
    "tpu.trace_stop"() : () -> ()
    %cst_16 = arith.constant 0.353553385 : f32
    %45 = vector.broadcast %cst_16 : f32 to vector<2x8x8xf32>
    %46 = arith.mulf %44, %45 : vector<2x8x8xf32>
    %47 = vector.broadcast %5 : vector<2x1x8xf32> to vector<2x8x8xf32>
    %48 = arith.addf %46, %47 : vector<2x8x8xf32>
    %cst_17 = arith.constant dense<0xFF800000> : vector<2x8xf32>
    %49 = vector.multi_reduction <maximumf>, %48, %cst_17 [2] : vector<2x8x8xf32> to vector<2x8xf32>
    %50 = vector.shape_cast %49 : vector<2x8xf32> to vector<2x8x1xf32>
    %51 = vector.broadcast %50 : vector<2x8x1xf32> to vector<2x8x8xf32>
    %52 = arith.subf %48, %51 : vector<2x8x8xf32>
    %53 = math.exp %52 : vector<2x8x8xf32>
    %cst_18 = arith.constant dense<0.000000e+00> : vector<2x8xf32>
    %54 = vector.multi_reduction <add>, %53, %cst_18 [2] : vector<2x8x8xf32> to vector<2x8xf32>
    %55 = vector.shape_cast %54 : vector<2x8xf32> to vector<2x8x1xf32>
    %56 = tpu.reciprocal %55 {approx = true} : vector<2x8x1xf32> -> vector<2x8x1xf32>
    %57 = vector.broadcast %56 : vector<2x8x1xf32> to vector<2x8x8xf32>
    %58 = arith.mulf %53, %57 : vector<2x8x8xf32>
    %59 = arith.truncf %58 : vector<2x8x8xf32> to vector<2x8x8xbf16>
    %60 = arith.truncf %41 : vector<2x8x8xf32> to vector<2x8x8xbf16>
    "tpu.trace_start"() <{level = 10 : i32, message = "bqk,bkd->bqd"}> : () -> ()
    %cst_19 = arith.constant dense<0.000000e+00> : vector<2x8x8xf32>
    %61 = tpu.matmul %59, %60, %cst_19 {dimension_numbers = #tpu.dot_dimension_numbers<[2], [1], [1], [2], [0, 0, 0, 1, 1, 2], [0], [0]>} : vector<2x8x8xbf16>, vector<2x8x8xbf16>, vector<2x8x8xf32> -> vector<2x8x8xf32>
    "tpu.trace_stop"() : () -> ()
    %62 = vector.shape_cast %61 : vector<2x8x8xf32> to vector<16x8xf32>
    %63 = vector.extract_strided_slice %14 {offsets = [0, 0, 16], sizes = [2, 8, 8], strides = [1, 1, 1]} : vector<2x8x96xf32> to vector<2x8x8xf32>
    %64 = vector.extract_strided_slice %14 {offsets = [0, 0, 48], sizes = [2, 8, 8], strides = [1, 1, 1]} : vector<2x8x96xf32> to vector<2x8x8xf32>
    %65 = vector.extract_strided_slice %14 {offsets = [0, 0, 80], sizes = [2, 8, 8], strides = [1, 1, 1]} : vector<2x8x96xf32> to vector<2x8x8xf32>
    %66 = arith.truncf %63 : vector<2x8x8xf32> to vector<2x8x8xbf16>
    %67 = arith.truncf %64 : vector<2x8x8xf32> to vector<2x8x8xbf16>
    "tpu.trace_start"() <{level = 10 : i32, message = "bqd,bkd->bqk"}> : () -> ()
    %cst_20 = arith.constant dense<0.000000e+00> : vector<2x8x8xf32>
    %68 = tpu.matmul %66, %67, %cst_20 {dimension_numbers = #tpu.dot_dimension_numbers<[2], [2], [1], [1], [0, 0, 0, 1, 1, 1], [0], [0]>} : vector<2x8x8xbf16>, vector<2x8x8xbf16>, vector<2x8x8xf32> -> vector<2x8x8xf32>
    "tpu.trace_stop"() : () -> ()
    %cst_21 = arith.constant 0.353553385 : f32
    %69 = vector.broadcast %cst_21 : f32 to vector<2x8x8xf32>
    %70 = arith.mulf %68, %69 : vector<2x8x8xf32>
    %71 = vector.broadcast %5 : vector<2x1x8xf32> to vector<2x8x8xf32>
    %72 = arith.addf %70, %71 : vector<2x8x8xf32>
    %cst_22 = arith.constant dense<0xFF800000> : vector<2x8xf32>
    %73 = vector.multi_reduction <maximumf>, %72, %cst_22 [2] : vector<2x8x8xf32> to vector<2x8xf32>
    %74 = vector.shape_cast %73 : vector<2x8xf32> to vector<2x8x1xf32>
    %75 = vector.broadcast %74 : vector<2x8x1xf32> to vector<2x8x8xf32>
    %76 = arith.subf %72, %75 : vector<2x8x8xf32>
    %77 = math.exp %76 : vector<2x8x8xf32>
    %cst_23 = arith.constant dense<0.000000e+00> : vector<2x8xf32>
    %78 = vector.multi_reduction <add>, %77, %cst_23 [2] : vector<2x8x8xf32> to vector<2x8xf32>
    %79 = vector.shape_cast %78 : vector<2x8xf32> to vector<2x8x1xf32>
    %80 = tpu.reciprocal %79 {approx = true} : vector<2x8x1xf32> -> vector<2x8x1xf32>
    %81 = vector.broadcast %80 : vector<2x8x1xf32> to vector<2x8x8xf32>
    %82 = arith.mulf %77, %81 : vector<2x8x8xf32>
    %83 = arith.truncf %82 : vector<2x8x8xf32> to vector<2x8x8xbf16>
    %84 = arith.truncf %65 : vector<2x8x8xf32> to vector<2x8x8xbf16>
    "tpu.trace_start"() <{level = 10 : i32, message = "bqk,bkd->bqd"}> : () -> ()
    %cst_24 = arith.constant dense<0.000000e+00> : vector<2x8x8xf32>
    %85 = tpu.matmul %83, %84, %cst_24 {dimension_numbers = #tpu.dot_dimension_numbers<[2], [1], [1], [2], [0, 0, 0, 1, 1, 2], [0], [0]>} : vector<2x8x8xbf16>, vector<2x8x8xbf16>, vector<2x8x8xf32> -> vector<2x8x8xf32>
    "tpu.trace_stop"() : () -> ()
    %86 = vector.shape_cast %85 : vector<2x8x8xf32> to vector<16x8xf32>
    %87 = vector.extract_strided_slice %14 {offsets = [0, 0, 24], sizes = [2, 8, 8], strides = [1, 1, 1]} : vector<2x8x96xf32> to vector<2x8x8xf32>
    %88 = vector.extract_strided_slice %14 {offsets = [0, 0, 56], sizes = [2, 8, 8], strides = [1, 1, 1]} : vector<2x8x96xf32> to vector<2x8x8xf32>
    %89 = vector.extract_strided_slice %14 {offsets = [0, 0, 88], sizes = [2, 8, 8], strides = [1, 1, 1]} : vector<2x8x96xf32> to vector<2x8x8xf32>
    %90 = arith.truncf %87 : vector<2x8x8xf32> to vector<2x8x8xbf16>
    %91 = arith.truncf %88 : vector<2x8x8xf32> to vector<2x8x8xbf16>
    "tpu.trace_start"() <{level = 10 : i32, message = "bqd,bkd->bqk"}> : () -> ()
    %cst_25 = arith.constant dense<0.000000e+00> : vector<2x8x8xf32>
    %92 = tpu.matmul %90, %91, %cst_25 {dimension_numbers = #tpu.dot_dimension_numbers<[2], [2], [1], [1], [0, 0, 0, 1, 1, 1], [0], [0]>} : vector<2x8x8xbf16>, vector<2x8x8xbf16>, vector<2x8x8xf32> -> vector<2x8x8xf32>
    "tpu.trace_stop"() : () -> ()
    %cst_26 = arith.constant 0.353553385 : f32
    %93 = vector.broadcast %cst_26 : f32 to vector<2x8x8xf32>
    %94 = arith.mulf %92, %93 : vector<2x8x8xf32>
    %95 = vector.broadcast %5 : vector<2x1x8xf32> to vector<2x8x8xf32>
    %96 = arith.addf %94, %95 : vector<2x8x8xf32>
    %cst_27 = arith.constant dense<0xFF800000> : vector<2x8xf32>
    %97 = vector.multi_reduction <maximumf>, %96, %cst_27 [2] : vector<2x8x8xf32> to vector<2x8xf32>
    %98 = vector.shape_cast %97 : vector<2x8xf32> to vector<2x8x1xf32>
    %99 = vector.broadcast %98 : vector<2x8x1xf32> to vector<2x8x8xf32>
    %100 = arith.subf %96, %99 : vector<2x8x8xf32>
    %101 = math.exp %100 : vector<2x8x8xf32>
    %cst_28 = arith.constant dense<0.000000e+00> : vector<2x8xf32>
    %102 = vector.multi_reduction <add>, %101, %cst_28 [2] : vector<2x8x8xf32> to vector<2x8xf32>
    %103 = vector.shape_cast %102 : vector<2x8xf32> to vector<2x8x1xf32>
    %104 = tpu.reciprocal %103 {approx = true} : vector<2x8x1xf32> -> vector<2x8x1xf32>
    %105 = vector.broadcast %104 : vector<2x8x1xf32> to vector<2x8x8xf32>
    %106 = arith.mulf %101, %105 : vector<2x8x8xf32>
    %107 = arith.truncf %106 : vector<2x8x8xf32> to vector<2x8x8xbf16>
    %108 = arith.truncf %89 : vector<2x8x8xf32> to vector<2x8x8xbf16>
    "tpu.trace_start"() <{level = 10 : i32, message = "bqk,bkd->bqd"}> : () -> ()
    %cst_29 = arith.constant dense<0.000000e+00> : vector<2x8x8xf32>
    %109 = tpu.matmul %107, %108, %cst_29 {dimension_numbers = #tpu.dot_dimension_numbers<[2], [1], [1], [2], [0, 0, 0, 1, 1, 2], [0], [0]>} : vector<2x8x8xbf16>, vector<2x8x8xbf16>, vector<2x8x8xf32> -> vector<2x8x8xf32>
    "tpu.trace_stop"() : () -> ()
    %110 = vector.shape_cast %109 : vector<2x8x8xf32> to vector<16x8xf32>
    %111 = tpu.concatenate %38, %62, %86, %110 in 1 : vector<16x8xf32>, vector<16x8xf32>, vector<16x8xf32>, vector<16x8xf32> -> vector<16x32xf32>
    %112 = arith.truncf %111 : vector<16x32xf32> to vector<16x32xbf16>
    %c0_30 = arith.constant 0 : index
    %c0_31 = arith.constant 0 : index
    %c0_32 = arith.constant 0 : index
    %113 = vector.load %arg4[%c0_30, %c0_31, %c0_32] : memref<1x32x32xbf16, #tpu.memory_space<vmem>>, vector<1x32x32xbf16>
    %114 = vector.shape_cast %113 : vector<1x32x32xbf16> to vector<32x32xbf16>
    %cst_33 = arith.constant dense<0.000000e+00> : vector<16x32xf32>
    %115 = tpu.matmul %112, %114, %cst_33 {dimension_numbers = #tpu.dot_dimension_numbers<[1], [0], [0], [1], [0, 0, 1, 1], [], []>} : vector<16x32xbf16>, vector<32x32xbf16>, vector<16x32xf32> -> vector<16x32xf32>
    %c0_34 = arith.constant 0 : index
    %c2 = arith.constant 2 : index
    %c0_35 = arith.constant 0 : index
    %116 = vector.load %arg7[%c0_34, %c2, %c0_35] : memref<1x8x96xf32, #tpu.memory_space<vmem>>, vector<1x1x32xf32>
    %117 = vector.shape_cast %116 : vector<1x1x32xf32> to vector<1x32xf32>
    %118 = vector.broadcast %117 : vector<1x32xf32> to vector<16x32xf32>
    %119 = arith.addf %115, %118 : vector<16x32xf32>
    %120 = arith.addf %3, %119 : vector<16x32xf32>
    %c0_36 = arith.constant 0 : index
    %c3 = arith.constant 3 : index
    %c0_37 = arith.constant 0 : index
    %121 = vector.load %arg7[%c0_36, %c3, %c0_37] : memref<1x8x96xf32, #tpu.memory_space<vmem>>, vector<1x1x32xf32>
    %122 = vector.shape_cast %121 : vector<1x1x32xf32> to vector<1x32xf32>
    %c0_38 = arith.constant 0 : index
    %c4 = arith.constant 4 : index
    %c0_39 = arith.constant 0 : index
    %123 = vector.load %arg7[%c0_38, %c4, %c0_39] : memref<1x8x96xf32, #tpu.memory_space<vmem>>, vector<1x1x32xf32>
    %124 = vector.shape_cast %123 : vector<1x1x32xf32> to vector<1x32xf32>
    %cst_40 = arith.constant dense<0.000000e+00> : vector<16xf32>
    %125 = vector.multi_reduction <add>, %120, %cst_40 [1] : vector<16x32xf32> to vector<16xf32>
    %126 = vector.shape_cast %125 : vector<16xf32> to vector<16x1xf32>
    %cst_41 = arith.constant 3.200000e+01 : f32
    %127 = vector.broadcast %cst_41 : f32 to vector<16x1xf32>
    %128 = arith.divf %126, %127 : vector<16x1xf32>
    %129 = vector.broadcast %128 : vector<16x1xf32> to vector<16x32xf32>
    %130 = arith.subf %120, %129 : vector<16x32xf32>
    %131 = arith.mulf %130, %130 : vector<16x32xf32>
    %cst_42 = arith.constant dense<0.000000e+00> : vector<16xf32>
    %132 = vector.multi_reduction <add>, %131, %cst_42 [1] : vector<16x32xf32> to vector<16xf32>
    %133 = vector.shape_cast %132 : vector<16xf32> to vector<16x1xf32>
    %cst_43 = arith.constant 3.200000e+01 : f32
    %134 = vector.broadcast %cst_43 : f32 to vector<16x1xf32>
    %135 = arith.divf %133, %134 : vector<16x1xf32>
    %cst_44 = arith.constant 9.99999996E-13 : f32
    %136 = vector.broadcast %cst_44 : f32 to vector<16x1xf32>
    %137 = arith.addf %135, %136 : vector<16x1xf32>
    %138 = math.rsqrt %137 : vector<16x1xf32>
    %139 = vector.broadcast %138 : vector<16x1xf32> to vector<16x32xf32>
    %140 = arith.mulf %130, %139 : vector<16x32xf32>
    %141 = vector.broadcast %122 : vector<1x32xf32> to vector<16x32xf32>
    %142 = arith.mulf %140, %141 : vector<16x32xf32>
    %143 = vector.broadcast %124 : vector<1x32xf32> to vector<16x32xf32>
    %144 = arith.addf %142, %143 : vector<16x32xf32>
    %145 = arith.truncf %144 : vector<16x32xf32> to vector<16x32xbf16>
    %c0_45 = arith.constant 0 : index
    %c0_46 = arith.constant 0 : index
    %c0_47 = arith.constant 0 : index
    %146 = vector.load %arg5[%c0_45, %c0_46, %c0_47] : memref<1x32x64xbf16, #tpu.memory_space<vmem>>, vector<1x32x64xbf16>
    %147 = vector.shape_cast %146 : vector<1x32x64xbf16> to vector<32x64xbf16>
    %cst_48 = arith.constant dense<0.000000e+00> : vector<16x64xf32>
    %148 = tpu.matmul %145, %147, %cst_48 {dimension_numbers = #tpu.dot_dimension_numbers<[1], [0], [0], [1], [0, 0, 1, 1], [], []>} : vector<16x32xbf16>, vector<32x64xbf16>, vector<16x64xf32> -> vector<16x64xf32>
    %c0_49 = arith.constant 0 : index
    %c1 = arith.constant 1 : index
    %c0_50 = arith.constant 0 : index
    %149 = vector.load %arg7[%c0_49, %c1, %c0_50] : memref<1x8x96xf32, #tpu.memory_space<vmem>>, vector<1x1x64xf32>
    %150 = vector.shape_cast %149 : vector<1x1x64xf32> to vector<1x64xf32>
    %151 = vector.broadcast %150 : vector<1x64xf32> to vector<16x64xf32>
    %152 = arith.addf %148, %151 : vector<16x64xf32>
    %153 = arith.mulf %152, %152 : vector<16x64xf32>
    %154 = arith.mulf %152, %153 : vector<16x64xf32>
    %cst_51 = arith.constant 4.471500e-02 : f32
    %155 = vector.broadcast %cst_51 : f32 to vector<16x64xf32>
    %156 = arith.mulf %155, %154 : vector<16x64xf32>
    %157 = arith.addf %152, %156 : vector<16x64xf32>
    %cst_52 = arith.constant 0.797884583 : f32
    %158 = vector.broadcast %cst_52 : f32 to vector<16x64xf32>
    %159 = arith.mulf %158, %157 : vector<16x64xf32>
    %160 = math.tanh %159 : vector<16x64xf32>
    %cst_53 = arith.constant 1.000000e+00 : f32
    %161 = vector.broadcast %cst_53 : f32 to vector<16x64xf32>
    %162 = arith.addf %161, %160 : vector<16x64xf32>
    %cst_54 = arith.constant 5.000000e-01 : f32
    %163 = vector.broadcast %cst_54 : f32 to vector<16x64xf32>
    %164 = arith.mulf %163, %162 : vector<16x64xf32>
    %165 = arith.mulf %152, %164 : vector<16x64xf32>
    %166 = arith.truncf %165 : vector<16x64xf32> to vector<16x64xbf16>
    %c0_55 = arith.constant 0 : index
    %c0_56 = arith.constant 0 : index
    %c0_57 = arith.constant 0 : index
    %167 = vector.load %arg6[%c0_55, %c0_56, %c0_57] : memref<1x64x32xbf16, #tpu.memory_space<vmem>>, vector<1x64x32xbf16>
    %168 = vector.shape_cast %167 : vector<1x64x32xbf16> to vector<64x32xbf16>
    %cst_58 = arith.constant dense<0.000000e+00> : vector<16x32xf32>
    %169 = tpu.matmul %166, %168, %cst_58 {dimension_numbers = #tpu.dot_dimension_numbers<[1], [0], [0], [1], [0, 0, 1, 1], [], []>} : vector<16x64xbf16>, vector<64x32xbf16>, vector<16x32xf32> -> vector<16x32xf32>
    %c0_59 = arith.constant 0 : index
    %c5 = arith.constant 5 : index
    %c0_60 = arith.constant 0 : index
    %170 = vector.load %arg7[%c0_59, %c5, %c0_60] : memref<1x8x96xf32, #tpu.memory_space<vmem>>, vector<1x1x32xf32>
    %171 = vector.shape_cast %170 : vector<1x1x32xf32> to vector<1x32xf32>
    %172 = vector.broadcast %171 : vector<1x32xf32> to vector<16x32xf32>
    %173 = arith.addf %169, %172 : vector<16x32xf32>
    %174 = arith.addf %144, %173 : vector<16x32xf32>
    %c0_61 = arith.constant 0 : index
    %c6 = arith.constant 6 : index
    %c0_62 = arith.constant 0 : index
    %175 = vector.load %arg7[%c0_61, %c6, %c0_62] : memref<1x8x96xf32, #tpu.memory_space<vmem>>, vector<1x1x32xf32>
    %176 = vector.shape_cast %175 : vector<1x1x32xf32> to vector<1x32xf32>
    %c0_63 = arith.constant 0 : index
    %c7 = arith.constant 7 : index
    %c0_64 = arith.constant 0 : index
    %177 = vector.load %arg7[%c0_63, %c7, %c0_64] : memref<1x8x96xf32, #tpu.memory_space<vmem>>, vector<1x1x32xf32>
    %178 = vector.shape_cast %177 : vector<1x1x32xf32> to vector<1x32xf32>
    %cst_65 = arith.constant dense<0.000000e+00> : vector<16xf32>
    %179 = vector.multi_reduction <add>, %174, %cst_65 [1] : vector<16x32xf32> to vector<16xf32>
    %180 = vector.shape_cast %179 : vector<16xf32> to vector<16x1xf32>
    %cst_66 = arith.constant 3.200000e+01 : f32
    %181 = vector.broadcast %cst_66 : f32 to vector<16x1xf32>
    %182 = arith.divf %180, %181 : vector<16x1xf32>
    %183 = vector.broadcast %182 : vector<16x1xf32> to vector<16x32xf32>
    %184 = arith.subf %174, %183 : vector<16x32xf32>
    %185 = arith.mulf %184, %184 : vector<16x32xf32>
    %cst_67 = arith.constant dense<0.000000e+00> : vector<16xf32>
    %186 = vector.multi_reduction <add>, %185, %cst_67 [1] : vector<16x32xf32> to vector<16xf32>
    %187 = vector.shape_cast %186 : vector<16xf32> to vector<16x1xf32>
    %cst_68 = arith.constant 3.200000e+01 : f32
    %188 = vector.broadcast %cst_68 : f32 to vector<16x1xf32>
    %189 = arith.divf %187, %188 : vector<16x1xf32>
    %cst_69 = arith.constant 9.99999996E-13 : f32
    %190 = vector.broadcast %cst_69 : f32 to vector<16x1xf32>
    %191 = arith.addf %189, %190 : vector<16x1xf32>
    %192 = math.rsqrt %191 : vector<16x1xf32>
    %193 = vector.broadcast %192 : vector<16x1xf32> to vector<16x32xf32>
    %194 = arith.mulf %184, %193 : vector<16x32xf32>
    %195 = vector.broadcast %176 : vector<1x32xf32> to vector<16x32xf32>
    %196 = arith.mulf %194, %195 : vector<16x32xf32>
    %197 = vector.broadcast %178 : vector<1x32xf32> to vector<16x32xf32>
    %198 = arith.addf %196, %197 : vector<16x32xf32>
    %c0_70 = arith.constant 0 : index
    %c0_71 = arith.constant 0 : index
    %199 = vector.load %arg11[%c0_70, %c0_71] : memref<16x32xf32, #tpu.memory_space<vmem>>, vector<16x32xf32>
    tpu.vector_store %arg11[%c0_70, %c0_71], %198 {strides = array<i32>} : memref<16x32xf32, #tpu.memory_space<vmem>>, vector<16x32xf32>,
    %c1_i32 = arith.constant 1 : i32
    %200 = arith.cmpi eq, %arg0, %c1_i32 : i32
    %201 = arith.extui %200 : i1 to i32
    %c0_i32_72 = arith.constant 0 : i32
    %202 = arith.cmpi ne, %201, %c0_i32_72 : i32
    scf.if %202 {
      %203 = vector.shape_cast %198 : vector<16x32xf32> to vector<2x8x32xf32>
      %204 = vector.extract_strided_slice %203 {offsets = [0, 0, 0], sizes = [2, 1, 32], strides = [1, 1, 1]} : vector<2x8x32xf32> to vector<2x1x32xf32>
      %205 = vector.shape_cast %204 : vector<2x1x32xf32> to vector<2x32xf32>
      %206 = arith.truncf %205 : vector<2x32xf32> to vector<2x32xbf16>
      %c0_73 = arith.constant 0 : index
      %c0_74 = arith.constant 0 : index
      %207 = vector.load %arg8[%c0_73, %c0_74] : memref<32x32xbf16, #tpu.memory_space<vmem>>, vector<32x32xbf16>
      %cst_75 = arith.constant dense<0.000000e+00> : vector<2x32xf32>
      %208 = tpu.matmul %206, %207, %cst_75 {dimension_numbers = #tpu.dot_dimension_numbers<[1], [0], [0], [1], [0, 0, 1, 1], [], []>} : vector<2x32xbf16>, vector<32x32xbf16>, vector<2x32xf32> -> vector<2x32xf32>
      %c2_76 = arith.constant 2 : index
      %c0_77 = arith.constant 0 : index
      %209 = vector.load %arg9[%c2_76, %c0_77] : memref<5x32xf32, #tpu.memory_space<vmem>>, vector<1x32xf32>
      %210 = vector.broadcast %209 : vector<1x32xf32> to vector<2x32xf32>
      %211 = arith.addf %208, %210 : vector<2x32xf32>
      %212 = math.tanh %211 : vector<2x32xf32>
      %c3_78 = arith.constant 3 : index
      %c0_79 = arith.constant 0 : index
      %213 = vector.load %arg9[%c3_78, %c0_79] : memref<5x32xf32, #tpu.memory_space<vmem>>, vector<1x32xf32>
      %214 = vector.broadcast %213 : vector<1x32xf32> to vector<2x32xf32>
      %215 = arith.mulf %212, %214 : vector<2x32xf32>
      %cst_80 = arith.constant dense<0.000000e+00> : vector<2xf32>
      %216 = vector.multi_reduction <add>, %215, %cst_80 [1] : vector<2x32xf32> to vector<2xf32>
      %217 = vector.shape_cast %216 : vector<2xf32> to vector<2x1xf32>
      %c4_81 = arith.constant 4 : index
      %c0_82 = arith.constant 0 : index
      %218 = vector.load %arg9[%c4_81, %c0_82] : memref<5x32xf32, #tpu.memory_space<vmem>>, vector<1x1xf32>
      %219 = vector.broadcast %218 : vector<1x1xf32> to vector<2x1xf32>
      %220 = arith.addf %217, %219 : vector<2x1xf32>
      %c0_83 = arith.constant 0 : index
      %c0_84 = arith.constant 0 : index
      %221 = vector.load %arg10[%c0_83, %c0_84] : memref<2x1xf32, #tpu.memory_space<vmem>>, vector<2x1xf32>
      tpu.vector_store %arg10[%c0_83, %c0_84], %220 {strides = array<i32>} : memref<2x1xf32, #tpu.memory_space<vmem>>, vector<2x1xf32>,
    } else {
    }
    return
  }
  func.func @transform_0(%arg0: i32) -> (i32, i32) {
    %c0_i32 = arith.constant 0 : i32
    %c0_i32_0 = arith.constant 0 : i32
    %c0_i32_1 = arith.constant 0 : i32
    return %c0_i32, %c0_i32_0 : i32, i32
  }
  func.func @transform_1(%arg0: i32) -> (i32, i32) {
    %c0_i32 = arith.constant 0 : i32
    %c0_i32_0 = arith.constant 0 : i32
    %c0_i32_1 = arith.constant 0 : i32
    return %c0_i32, %c0_i32_0 : i32, i32
  }
  func.func @transform_2(%arg0: i32) -> (i32, i32, i32) {
    %c0_i32 = arith.constant 0 : i32
    %c0_i32_0 = arith.constant 0 : i32
    %c0_i32_1 = arith.constant 0 : i32
    return %arg0, %c0_i32, %c0_i32_0 : i32, i32, i32
  }
  func.func @transform_3(%arg0: i32) -> (i32, i32, i32) {
    %c0_i32 = arith.constant 0 : i32
    %c0_i32_0 = arith.constant 0 : i32
    %c0_i32_1 = arith.constant 0 : i32
    return %arg0, %c0_i32, %c0_i32_0 : i32, i32, i32
  }
  func.func @transform_4(%arg0: i32) -> (i32, i32, i32) {
    %c0_i32 = arith.constant 0 : i32
    %c0_i32_0 = arith.constant 0 : i32
    %c0_i32_1 = arith.constant 0 : i32
    return %arg0, %c0_i32, %c0_i32_0 : i32, i32, i32
  }
  func.func @transform_5(%arg0: i32) -> (i32, i32, i32) {
    %c0_i32 = arith.constant 0 : i32
    %c0_i32_0 = arith.constant 0 : i32
    %c0_i32_1 = arith.constant 0 : i32
    return %arg0, %c0_i32, %c0_i32_0 : i32, i32, i32
  }
  func.func @transform_6(%arg0: i32) -> (i32, i32, i32) {
    %c0_i32 = arith.constant 0 : i32
    %c0_i32_0 = arith.constant 0 : i32
    %c0_i32_1 = arith.constant 0 : i32
    return %arg0, %c0_i32, %c0_i32_0 : i32, i32, i32
  }
  func.func @transform_7(%arg0: i32) -> (i32, i32) {
    %c0_i32 = arith.constant 0 : i32
    %c0_i32_0 = arith.constant 0 : i32
    %c0_i32_1 = arith.constant 0 : i32
    return %c0_i32, %c0_i32_0 : i32, i32
  }
  func.func @transform_8(%arg0: i32) -> (i32, i32) {
    %c0_i32 = arith.constant 0 : i32
    %c0_i32_0 = arith.constant 0 : i32
    %c0_i32_1 = arith.constant 0 : i32
    return %c0_i32, %c0_i32_0 : i32, i32
  }
  func.func @transform_9(%arg0: i32) -> (i32, i32) {
    %c0_i32 = arith.constant 0 : i32
    %c0_i32_0 = arith.constant 0 : i32
    %c0_i32_1 = arith.constant 0 : i32
    return %c0_i32, %c0_i32_0 : i32, i32
  }
}

</mosaic_0001>

<bundles_post_ra>
// kernel: idiom_classifier_forward.1
= control target key start
LH: loop header
LB: loop body
LE: loop exit
PB: predicated region body
PF: predicated region fallthrough
CT: control target
= control target key end

     0   :  { %s2410_s30 = smov 0   ;;  %s2702_s0 = inlined_call_operand.vmem [shape: f32[16,32], index: 0, kind: input, shape index: {}]   ;;  %s2703_s1 = inlined_call_operand.vmem [shape: f32[2,8], index: 1, kind: input, shape index: {}]   ;;  %s2704_s2 = inlined_call_operand.vmem [shape: bf16[2,32,96], index: 2, kind: input, shape index: {}]   ;;  %s2705_s3 = inlined_call_operand.vmem [shape: bf16[2,32,32], index: 3, kind: input, shape index: {}]   ;;  %s2706_s4 = inlined_call_operand.vmem [shape: bf16[2,32,64], index: 4, kind: input, shape index: {}]   ;;  %s2707_s5 = inlined_call_operand.vmem [shape: bf16[2,64,32], index: 5, kind: input, shape index: {}]   ;;  %s2708_s6 = inlined_call_operand.vmem [shape: f32[2,8,96], index: 6, kind: input, shape index: {}]   ;;  %s2709_s7 = inlined_call_operand.vmem [shape: bf16[32,32], index: 7, kind: input, shape index: {}]   ;;  %s2710_s8 = inlined_call_operand.vmem [shape: f32[5,32], index: 8, kind: input, shape index: {}]   ;;  %s2711_s9 = inlined_call_operand.vmem [shape: f32[2,1], index: 9, kind: output, shape index: {}]  }
   0x1 LB: > { %s2416_s10 = sadd.s32 4294967295, %s2339_s30   ;;  %p1975_p0 = scmp.ge.s32.totalorder %s2339_s30, 1  ;;  %s2339_s30 = sphi %s2410_s30, %s19_s30  }
   0x2   : > { %p321_p1 = scmp.lt.s32.totalorder %s2339_s30, 3 }
   0x4   : > { %p322_p2 = pnand %p1975_p0, %p321_p1 }
   0x5   : > { %p371_p3 = scmp.lt.s32.totalorder (!%p322_p2), %s2416_s10, 1  ;;  %p1985_p4 = scmp.ne.s32.totalorder (!%p322_p2), %s2416_s10, 0 }
   0x6   : > { %325 = sbr.rel (%p322_p2) target bundleno = 4665 (0x1239), region = 56 }
   0xb   : > { %s372_s11 = scalar_select %p371_p3, %s2416_s10, 1 }
   0xd   : > { %s2036_s12 = sshll.u32 %s372_s11, 4  ;;  %s2039_s13 = sshll.u32 %s372_s11, 5 }
   0xe   : > { %s2425_s16 = scalar_lea.vmem %s2704_s2, %s2036_s12  ;;  %s2430_s19 = scalar_lea.vmem %s2705_s3, %s2036_s12 }
   0xf   : > { %s2435_s22 = scalar_lea.vmem %s2706_s4, %s2036_s12  ;;  %s2440_s25 = scalar_lea.vmem %s2707_s5, %s2039_s13 }
  0x10   : > { %s1984_s26 = sshll.u32 %s372_s11, 3  ;;  %399 = sbr.rel (%p1985_p4) target bundleno = 335 (0x14f), region = 60 }
  0x11   : > { %s2445_s29 = scalar_lea.vmem %s2708_s6, %s1984_s26 }
  0x15   : > { %v400_v0 = vld [vmem:[%s2702_s0] sm:$0xff]  ;;  %vm404_vm0 = vcmask 261120   ;;  %v401_v1 = vld [vmem:[%s2702_s0 + $0x8] sm:$0xff] }
  0x16   : > { %v405_v2 = vsel %vm404_vm0, %v400_v0, 0.0  ;;  %v408_v3 = vsel %vm404_vm0, %v401_v1, 0.0  ;;  %v1986_v21 = vld [vmem:[%s2710_s8] ss:$0 sm:$0xff]  ;;  %v1987_v23 = vld [vmem:[%s2710_s8 + $0x1] ss:$0 sm:$0xff] }
  0x17   : > { %406 = vadd.xlane.f32.xlu0 %v405_v2 }
  0x1b   : > { %409 = vadd.xlane.f32.xlu0 %v408_v3 }
  0xa0   : > { %v407_v4 = vpop.xlane.xlu0 %406 }
  0xa1   : > { %v412_v5 = vmul.f32 0.03125, %v407_v4 }
  0xa3   : > { %v414_v6 = vsub.f32 %v400_v0, %v412_v5 }
  0xa4   : > { %v410_v7 = vpop.xlane.xlu0 %409 }
  0xa5   : > { %v413_v8 = vmul.f32 0.03125, %v410_v7  ;;  %v416_v9 = vmul.f32 %v414_v6, %v414_v6 }
  0xa7   : > { %v415_v10 = vsub.f32 %v401_v1, %v413_v8  ;;  %v418_v11 = vsel %vm404_vm0, %v416_v9, 0.0 }
  0xa8   : > { %419 = vadd.xlane.f32.xlu1 %v418_v11 }
  0xa9   : > { %v417_v12 = vmul.f32 %v415_v10, %v415_v10 }
  0xab   : > { %v421_v13 = vsel %vm404_vm0, %v417_v12, 0.0 }
  0xac   : > { %422 = vadd.xlane.f32.xlu1 %v421_v13 }
 0x131   : > { %v420_v14 = vpop.xlane.xlu1 %419 }
 0x132   : > { %v424_v15 = vmul.f32 0.03125, %v420_v14 }
 0x134   : > { %v426_v16 = vadd.f32 1e-12, %v424_v15 }
 0x135   : > { %v423_v17 = vpop.xlane.xlu1 %422 }
 0x136   : > { %2256 = vrsqrt.f32 %v426_v16  ;;  %v425_v18 = vmul.f32 0.03125, %v423_v17 }
 0x138   : > { %v427_v19 = vadd.f32 1e-12, %v425_v18 }
 0x13a   : > { %2258 = vrsqrt.f32 %v427_v19 }
 0x143   : > { %v2257_v20 = vpop.eup %2256 }
 0x144   : > { %v430_v22 = vmul.f32 %v2257_v20, %v414_v6 }
 0x146   : > { %v436_v24 = vmul.f32 %v1986_v21, %v430_v22 }
 0x147   : > { %v2259_v25 = vpop.eup %2258 }
 0x148   : > { %v442_v26 = vadd.f32 %v1987_v23, %v436_v24  ;;  %v431_v27 = vmul.f32 %v2259_v25, %v415_v10 }
 0x14a   : > { %444 = vst.msk [vmem:[#allocation2] sm:$0xff] %vm404_vm0, %v442_v26  ;;  %v437_v28 = vmul.f32 %v1986_v21, %v431_v27 }
 0x14c   : > { %v443_v29 = vadd.f32 %v1987_v23, %v437_v28 }
 0x14e   : > { %445 = vst.msk [vmem:[#allocation2 + $0x8] sm:$0xff] %vm404_vm0, %v443_v29 }
 0x14f PF: > { %v2275_v30 = vld [vmem:[%s2425_s16 + $0x8] sm:$0xff]   ;;  %v2341_v31 = vmov 0.0   ;;  %v2276_v32 = vld [vmem:[%s2425_s16] sm:$0xff]   ;;  %vm2342_vm1 = vmmov 0   ;;  %vm494_vm2 = vcmask 261120   ;;  %s2343_s16 = smov 96   ;;  %v461_v51 = vlaneseq }
 0x150   : > { %2089 = vmatprep.subr.bf16.mxu0 %v2341_v31  ;;  %2097 = vmatprep.subr.bf16.mxu1 %v2341_v31  ;;  %v1989_v36 = vld [vmem:[%s2445_s29] ss:$0 sm:$0xff]  ;;  %vm544_vm3 = vcmask 64512   ;;  %v2344_v49 = vmov 1966171168   ;;  %s2345_s24 = smov 64  }
 0x151   : > { %2090 = vmatpush3.bf16.msra.mxu0 %v2275_v30  ;;  %2093 = vmatprep.mubr.msk.bf16.mxu0 %vm2342_vm1, %v2341_v31  ;;  %v2472_v33 = vld [vmem:[#allocation2] sm:$0xff]  ;;  %v459_v50 = vunpack.c.l.s4 %v2344_v49  ;;  %v462_v53 = vshrl.u32 %v461_v51, 7  ;;  %s2346_s26 = smov 88   ;;  %vm683_vm4 = vcmask 1043456   ;;  %s2347_s27 = smov 120   ;;  %vm1473_vm5 = vcmask 130048  }
 0x152   : > { %2091 = vmatprep.subr.bf16.mxu0 %v2341_v31  ;;  %2099 = vmatprep.mubr.msk.bf16.mxu1 %vm2342_vm1, %v2341_v31  ;;  %v1988_v55 = vld.sshfl [vmem:[%s2703_s1] sm:$0x11 pattern:$0x75316420]  ;;  %s2348_s28 = smov 56   ;;  %s2349_s14 = smov 80  }
 0x153   : > { %v460_v52 = vunpack.c.0.s8 %v459_v50  ;;  %v457_v56 = vcombine.high %v1988_v55, %v1988_v55  ;;  %v644_v58 = vsub.s32 0, %v462_v53  ;;  %s2350_s15 = smov 112   ;;  %s2351_s12 = smov 48   ;;  %vm1476_vm6 = vcmask 195584  }
 0x154   : > { %s2352_s17 = smov 72   ;;  %s2353_s11 = smov 104   ;;  %vm1710_vm7 = vcmask 523264  }
 0x155   : > { %v2474_v34 = vld [vmem:[#allocation2 + $0x8] sm:$0xff]  ;;  %2092 = vmatpush3.bf16.msra.mxu0 %v2276_v32  ;;  %v463_v54 = vsub.s32 %v460_v52, %v462_v53  ;;  %s2354_s13 = smov 40   ;;  %s2355_s18 = smov 8  }
 0x156   : > { %v472_v35 = vpack.c.bf16 %v2474_v34, %v2472_v33  ;;  %2103 = vmatprep.subr.bf16.mxu0 %v2341_v31  ;;  %s2356_s20 = smov 16   ;;  %p2027_p5 = scmp.ne.s32.totalorder %s2416_s10, 1 }
 0x157   : > { %v464_v57 = vrot.slane %v1988_v55, %v463_v54  ;;  %v471_v60 = vrot.slane %v457_v56, %v463_v54 }
 0x158   : > { %2094 = vmatmul.mubr.msk.bf16.vlgmr.msra.gmra.mxu0 %vm494_vm2, %v472_v35 }
 0x159   : > { %2105 = vmatprep.mubr.msk.bf16.mxu0 %vm2342_vm1, %v2341_v31  ;;  %v2507_v59 = vrot.slane %v464_v57, %v644_v58  ;;  %v2510_v1 = vrot.slane %v471_v60, %v644_v58 }
 0x218   : > { %v532_v37 = vpop.f32.mrf.mxu0 }
 0x219   : > { %v533_v38 = vadd.f32 %v1989_v36, %v532_v37 }
 0x21a   : > { %v2095_v39 = vpop.f32.mrf.mxu0 }
 0x21b   : > { %v2486_v40 = vpack.c.bf16 %v533_v38, %v533_v38 }
 0x21c   : > { %v535_v41 = vpop.f32.mrf.mxu0 }
 0x21d   : > { %v536_v42 = vadd.f32 %v1989_v36, %v535_v41  ;;  %542 = vrot.lane.b32.xlu0 %v2486_v40, %s2343_s16 }
 0x21e   : > { %v2096_v43 = vpop.f32.mrf.mxu0 }
 0x21f   : > { %v2489_v44 = vpack.c.bf16 %v536_v42, %v536_v42 }
 0x221   : > { %592 = vrot.lane.b32.xlu0 %v2489_v44, %s2343_s16  ;;  %s2357_s16 = smov 24  }
 0x28f   : > { %v543_v45 = vpop.permute.xlu0 %542 }
 0x290   : > { %v549_v46 = vsel %vm544_vm3, %v543_v45, 0 }
 0x291   : > { %2098 = vmatpush3.bf16.xpose.msra.mxu1 %v549_v46 }
 0x292   : > { %2109 = vmatprep.subr.bf16.mxu1 %v2341_v31 }
 0x293   : > { %v593_v47 = vpop.permute.xlu0 %592 }
 0x294   : > { %v598_v48 = vsel %vm544_vm3, %v593_v47, 0 }
 0x295   : > { %2104 = vmatpush3.bf16.xpose.msra.mxu0 %v598_v48 }
 0x296   : > { %2115 = vmatprep.subr.bf16.mxu0 %v2341_v31 }
 0x298   : > { %2100 = vmatmul.mubr.msk.bf16.vlgmr.msra.gmra.mxu1 %vm544_vm3, %v2486_v40 }
 0x299   : > { %2111 = vmatprep.mubr.msk.bf16.mxu1 %vm2342_vm1, %v2341_v31 }
 0x29c   : > { %2106 = vmatmul.mubr.msk.bf16.vlgmr.msra.gmra.mxu0 %vm544_vm3, %v2489_v44 }
 0x29d   : > { %2117 = vmatprep.mubr.msk.bf16.mxu0 %vm2342_vm1, %v2341_v31 }
 0x358   : > { %v585_v61 = vpop.f32.mrf.mxu1 }
 0x359   : > { %v640_v62 = vmul.f32 0.35355338, %v585_v61 }
 0x35a   : > { %v2101_v63 = vpop.f32.mrf.mxu1 }
 0x35b   : > { %v652_v0 = vadd.f32 %v2507_v59, %v640_v62 }
 0x35c   : > { %v588_v2 = vpop.f32.mrf.mxu1  ;;  %v634_v3 = vpop.f32.mrf.mxu0 }
 0x35d   : > { %v641_v4 = vmul.f32 0.35355338, %v634_v3  ;;  %v654_v5 = vsel %vm544_vm3, %v652_v0, -inf }
 0x35e   : > { %655 = vmax.xlane.f32.xlu1 %v654_v5  ;;  %v2102_v6 = vpop.f32.mrf.mxu1  ;;  %v2107_v7 = vpop.f32.mrf.mxu0 }
 0x35f   : > { %v653_v8 = vadd.f32 %v2510_v1, %v641_v4 }
 0x360   : > { %v637_v9 = vpop.f32.mrf.mxu0 }
 0x361   : > { %v657_v10 = vsel %vm544_vm3, %v653_v8, -inf }
 0x362   : > { %658 = vmax.xlane.f32.xlu1 %v657_v10  ;;  %v2108_v11 = vpop.f32.mrf.mxu0 }
 0x373   : > { %678 = vrot.lane.b32.xlu1 %v2486_v40, %s2345_s24 }
 0x377   : > { %727 = vrot.lane.b32.xlu1 %v2489_v44, %s2345_s24 }
 0x37b   : > { %777 = vrot.lane.b32.xlu1 %v2486_v40, %s2346_s26 }
 0x3e7   : > { %v656_v12 = vpop.xlane.xlu1 %655 }
 0x3e8   : > { %v660_v13 = vsub.f32 %v652_v0, %v656_v12 }
 0x3ea   : > { %v662_v14 = vmul.f32 1.442695, %v660_v13 }
 0x3eb   : > { %v659_v15 = vpop.xlane.xlu1 %658 }
 0x3ec   : > { %2285 = vpow2.f32 %v662_v14  ;;  %v661_v16 = vsub.f32 %v653_v8, %v659_v15 }
 0x3ee   : > { %v664_v17 = vmul.f32 1.442695, %v661_v16 }
 0x3ef   : > { %v679_v18 = vpop.permute.xlu1 %678 }
 0x3f0   : > { %2287 = vpow2.f32 %v664_v17  ;;  %v685_v19 = vsel %vm683_vm4, %v679_v18, 0 }
 0x3f1   : > { %2110 = vmatpush3.bf16.msra.mxu1 %v685_v19 }
 0x3f2   : > { %2121 = vmatprep.subr.bf16.mxu1 %v2341_v31 }
 0x3f3   : > { %v728_v20 = vpop.permute.xlu1 %727 }
 0x3f4   : > { %v733_v21 = vsel %vm683_vm4, %v728_v20, 0 }
 0x3f5   : > { %2116 = vmatpush3.bf16.msra.mxu0 %v733_v21 }
 0x3f6   : > { %2127 = vmatprep.subr.bf16.mxu0 %v2341_v31 }
 0x3f7   : > { %v778_v26 = vpop.permute.xlu1 %777 }
 0x3f8   : > { %v783_v36 = vsel %vm544_vm3, %v778_v26, 0 }
 0x3f9   : > { %v2286_v22 = vpop.eup %2285 }
 0x3fa   : > { %v666_v23 = vsel %vm544_vm3, %v2286_v22, 0.0 }
 0x3fb   : > { %667 = vadd.xlane.f32.xlu0 %v666_v23 }
 0x3fd   : > { %v2288_v24 = vpop.eup %2287 }
 0x3fe   : > { %v669_v25 = vsel %vm544_vm3, %v2288_v24, 0.0 }
 0x3ff   : > { %670 = vadd.xlane.f32.xlu1 %v669_v25 }
 0x410   : > { %827 = vrot.lane.b32.xlu1 %v2489_v44, %s2346_s26 }
 0x411   : > { %775 = vrot.lane.b32.xlu0 %v2486_v40, %s2347_s27 }
 0x414   : > { %825 = vrot.lane.b32.xlu1 %v2489_v44, %s2347_s27 }
 0x484   : > { %v668_v27 = vpop.xlane.xlu0 %667 }
 0x485   : > { %2289 = vrcp.f32 %v668_v27 }
 0x488   : > { %v671_v28 = vpop.xlane.xlu1 %670  ;;  %v776_v42 = vpop.permute.xlu0 %775 }
 0x489   : > { %2291 = vrcp.f32 %v671_v28 }
 0x48c   : > { %v828_v38 = vpop.permute.xlu1 %827 }
 0x48d   : > { %v833_v41 = vsel %vm544_vm3, %v828_v38, 0 }
 0x490   : > { %v826_v43 = vpop.permute.xlu1 %825 }
 0x492   : > { %v2290_v29 = vpop.eup %2289 }
 0x493   : > { %v674_v30 = vmul.f32 %v2290_v29, %v2286_v22 }
 0x495   : > { %v676_v32 = vpack.c.bf16 %v674_v30, %v674_v30 }
 0x496   : > { %v2292_v35 = vpop.eup %2291 }
 0x497   : > { %2112 = vmatmul.mubr.msk.bf16.vlgmr.msra.gmra.mxu1 %vm544_vm3, %v676_v32  ;;  %v675_v37 = vmul.f32 %v2292_v35, %v2288_v24 }
 0x498   : > { %2122 = vmatpush3.bf16.xpose.msra.mxu1 %v783_v36  ;;  %2123 = vmatprep.mubr.msk.bf16.mxu1 %vm2342_vm1, %v2341_v31 }
 0x499   : > { %v677_v39 = vpack.c.bf16 %v675_v37, %v675_v37  ;;  %2133 = vmatprep.subr.bf16.mxu1 %v2341_v31 }
 0x49b   : > { %2118 = vmatmul.mubr.msk.bf16.vlgmr.msra.gmra.mxu0 %vm544_vm3, %v677_v39 }
 0x49c   : > { %2128 = vmatpush3.bf16.xpose.msra.mxu0 %v833_v41  ;;  %2129 = vmatprep.mubr.msk.bf16.mxu0 %vm2342_vm1, %v2341_v31 }
 0x49d   : > { %2139 = vmatprep.subr.bf16.mxu0 %v2341_v31 }
 0x49f   : > { %2124 = vmatmul.mubr.msk.bf16.vlgmr.msra.gmra.mxu1 %vm544_vm3, %v776_v42 }
 0x4a0   : > { %2135 = vmatprep.mubr.msk.bf16.mxu1 %vm2342_vm1, %v2341_v31 }
 0x4a3   : > { %2130 = vmatmul.mubr.msk.bf16.vlgmr.msra.gmra.mxu0 %vm544_vm3, %v826_v43 }
 0x4a4   : > { %2141 = vmatprep.mubr.msk.bf16.mxu0 %vm2342_vm1, %v2341_v31 }
 0x557   : > { %v2543_v45 = vpop.f32.mrf.mxu1 }
 0x559   : > { %v2113_v46 = vpop.f32.mrf.mxu1 }
 0x55b   : > { %v724_v47 = vpop.f32.mrf.mxu1  ;;  %v2545_v48 = vpop.f32.mrf.mxu0 }
 0x55d   : > { %v2114_v49 = vpop.f32.mrf.mxu1  ;;  %v2119_v50 = vpop.f32.mrf.mxu0 }
 0x55f   : > { %v772_v51 = vpop.f32.mrf.mxu0  ;;  %v819_v52 = vpop.f32.mrf.mxu1 }
 0x560   : > { %v875_v53 = vmul.f32 0.35355338, %v819_v52 }
 0x561   : > { %v2120_v54 = vpop.f32.mrf.mxu0  ;;  %v2125_v55 = vpop.f32.mrf.mxu1 }
 0x562   : > { %v877_v56 = vadd.f32 %v875_v53, %v2507_v59 }
 0x563   : > { %v822_v57 = vpop.f32.mrf.mxu1  ;;  %v869_v58 = vpop.f32.mrf.mxu0 }
 0x564   : > { %v876_v60 = vmul.f32 0.35355338, %v869_v58  ;;  %v879_v61 = vsel %vm544_vm3, %v877_v56, -inf }
 0x565   : > { %880 = vmax.xlane.f32.xlu1 %v879_v61  ;;  %v2126_v62 = vpop.f32.mrf.mxu1  ;;  %v2131_v63 = vpop.f32.mrf.mxu0 }
 0x566   : > { %v878_v0 = vadd.f32 %v876_v60, %v2510_v1 }
 0x567   : > { %v872_v2 = vpop.f32.mrf.mxu0 }
 0x568   : > { %v882_v3 = vsel %vm544_vm3, %v878_v0, -inf }
 0x569   : > { %883 = vmax.xlane.f32.xlu0 %v882_v3  ;;  %v2132_v4 = vpop.f32.mrf.mxu0 }
 0x576   : > { %903 = vrot.lane.b32.xlu1 %v2486_v40, %s2348_s28 }
 0x57a   : > { %1001 = vrot.lane.b32.xlu1 %v2486_v40, %s2349_s14 }
 0x57f   : > { %951 = vrot.lane.b32.xlu0 %v2489_v44, %s2348_s28 }
 0x583   : > { %999 = vrot.lane.b32.xlu0 %v2486_v40, %s2350_s15 }
 0x5ee   : > { %v881_v5 = vpop.xlane.xlu1 %880 }
 0x5ef   : > { %v885_v6 = vsub.f32 %v877_v56, %v881_v5 }
 0x5f1   : > { %v887_v7 = vmul.f32 1.442695, %v885_v6 }
 0x5f2   : > { %v904_v8 = vpop.permute.xlu1 %903  ;;  %v884_v9 = vpop.xlane.xlu0 %883 }
 0x5f3   : > { %2293 = vpow2.f32 %v887_v7  ;;  %v909_v10 = vsel %vm683_vm4, %v904_v8, 0  ;;  %v886_v11 = vsub.f32 %v878_v0, %v884_v9 }
 0x5f4   : > { %2134 = vmatpush3.bf16.msra.mxu1 %v909_v10 }
 0x5f5   : > { %v889_v12 = vmul.f32 1.442695, %v886_v11  ;;  %2145 = vmatprep.subr.bf16.mxu1 %v2341_v31 }
 0x5f6   : > { %v952_v13 = vpop.permute.xlu0 %951  ;;  %v1002_v19 = vpop.permute.xlu1 %1001 }
 0x5f7   : > { %2295 = vpow2.f32 %v889_v12  ;;  %v957_v14 = vsel %vm683_vm4, %v952_v13, 0  ;;  %v1007_v26 = vsel %vm544_vm3, %v1002_v19, 0 }
 0x5f8   : > { %2140 = vmatpush3.bf16.msra.mxu0 %v957_v14 }
 0x5f9   : > { %2151 = vmatprep.subr.bf16.mxu0 %v2341_v31 }
 0x5fa   : > { %v1000_v32 = vpop.permute.xlu0 %999 }
 0x600   : > { %v2294_v15 = vpop.eup %2293 }
 0x601   : > { %v891_v16 = vsel %vm544_vm3, %v2294_v15, 0.0 }
 0x602   : > { %892 = vadd.xlane.f32.xlu1 %v891_v16 }
 0x604   : > { %v2296_v17 = vpop.eup %2295 }
 0x605   : > { %v894_v18 = vsel %vm544_vm3, %v2296_v17, 0.0 }
 0x606   : > { %895 = vadd.xlane.f32.xlu1 %v894_v18 }
 0x617   : > { %1051 = vrot.lane.b32.xlu1 %v2489_v44, %s2349_s14 }
 0x61b   : > { %1049 = vrot.lane.b32.xlu1 %v2489_v44, %s2350_s15 }
 0x68b   : > { %v893_v20 = vpop.xlane.xlu1 %892 }
 0x68c   : > { %2297 = vrcp.f32 %v893_v20 }
 0x68f   : > { %v896_v21 = vpop.xlane.xlu1 %895 }
 0x690   : > { %2299 = vrcp.f32 %v896_v21 }
 0x693   : > { %v1052_v28 = vpop.permute.xlu1 %1051 }
 0x694   : > { %v1057_v30 = vsel %vm544_vm3, %v1052_v28, 0 }
 0x697   : > { %v1050_v35 = vpop.permute.xlu1 %1049 }
 0x699   : > { %v2298_v22 = vpop.eup %2297 }
 0x69a   : > { %v899_v23 = vmul.f32 %v2298_v22, %v2294_v15 }
 0x69c   : > { %v901_v24 = vpack.c.bf16 %v899_v23, %v899_v23 }
 0x69d   : > { %v2300_v25 = vpop.eup %2299 }
 0x69e   : > { %2136 = vmatmul.mubr.msk.bf16.vlgmr.msra.gmra.mxu1 %vm544_vm3, %v901_v24  ;;  %v900_v27 = vmul.f32 %v2300_v25, %v2296_v17 }
 0x69f   : > { %2146 = vmatpush3.bf16.xpose.msra.mxu1 %v1007_v26  ;;  %2147 = vmatprep.mubr.msk.bf16.mxu1 %vm2342_vm1, %v2341_v31 }
 0x6a0   : > { %v902_v29 = vpack.c.bf16 %v900_v27, %v900_v27  ;;  %2157 = vmatprep.subr.bf16.mxu1 %v2341_v31 }
 0x6a2   : > { %2142 = vmatmul.mubr.msk.bf16.vlgmr.msra.gmra.mxu0 %vm544_vm3, %v902_v29 }
 0x6a3   : > { %2152 = vmatpush3.bf16.xpose.msra.mxu0 %v1057_v30  ;;  %2153 = vmatprep.mubr.msk.bf16.mxu0 %vm2342_vm1, %v2341_v31 }
 0x6a4   : > { %2163 = vmatprep.subr.bf16.mxu0 %v2341_v31 }
 0x6a6   : > { %2148 = vmatmul.mubr.msk.bf16.vlgmr.msra.gmra.mxu1 %vm544_vm3, %v1000_v32 }
 0x6a7   : > { %2159 = vmatprep.mubr.msk.bf16.mxu1 %vm2342_vm1, %v2341_v31 }
 0x6aa   : > { %2154 = vmatmul.mubr.msk.bf16.vlgmr.msra.gmra.mxu0 %vm544_vm3, %v1050_v35 }
 0x6ab   : > { %2165 = vmatprep.mubr.msk.bf16.mxu0 %vm2342_vm1, %v2341_v31 }
 0x75e   : > { %v2579_v36 = vpop.f32.mrf.mxu1 }
 0x760   : > { %v2137_v37 = vpop.f32.mrf.mxu1 }
 0x762   : > { %v948_v38 = vpop.f32.mrf.mxu1  ;;  %v2581_v39 = vpop.f32.mrf.mxu0 }
 0x763   : > { %v2260_v41 = vpack.i.bf16 %v2581_v39, %v2579_v36 }
 0x764   : > { %v2138_v42 = vpop.f32.mrf.mxu1  ;;  %v2143_v43 = vpop.f32.mrf.mxu0 }
 0x766   : > { %v996_v46 = vpop.f32.mrf.mxu0  ;;  %v1043_v47 = vpop.f32.mrf.mxu1 }
 0x767   : > { %v1099_v49 = vmul.f32 0.35355338, %v1043_v47 }
 0x768   : > { %v2144_v50 = vpop.f32.mrf.mxu0  ;;  %v2149_v51 = vpop.f32.mrf.mxu1 }
 0x769   : > { %v1101_v52 = vadd.f32 %v1099_v49, %v2507_v59 }
 0x76a   : > { %v1046_v53 = vpop.f32.mrf.mxu1  ;;  %v1093_v54 = vpop.f32.mrf.mxu0 }
 0x76b   : > { %v1100_v55 = vmul.f32 0.35355338, %v1093_v54  ;;  %v1103_v56 = vsel %vm544_vm3, %v1101_v52, -inf }
 0x76c   : > { %1104 = vmax.xlane.f32.xlu0 %v1103_v56  ;;  %v2150_v57 = vpop.f32.mrf.mxu1  ;;  %v2155_v58 = vpop.f32.mrf.mxu0 }
 0x76d   : > { %v1102_v60 = vadd.f32 %v1100_v55, %v2510_v1 }
 0x76e   : > { %v1096_v61 = vpop.f32.mrf.mxu0 }
 0x76f   : > { %v1106_v62 = vsel %vm544_vm3, %v1102_v60, -inf }
 0x770   : > { %1107 = vmax.xlane.f32.xlu1 %v1106_v62  ;;  %v2156_v63 = vpop.f32.mrf.mxu0 }
 0x781   : > { %1127 = vrot.lane.b32.xlu1 %v2486_v40, %s2351_s12 }
 0x785   : > { %1225 = vrot.lane.b32.xlu1 %v2486_v40, %s2352_s17 }
 0x789   : > { %1275 = vrot.lane.b32.xlu1 %v2489_v44, %s2352_s17 }
 0x78d   : > { %1273 = vrot.lane.b32.xlu1 %v2489_v44, %s2353_s11 }
 0x7f5   : > { %v1105_v0 = vpop.xlane.xlu0 %1104 }
 0x7f6   : > { %v1109_v2 = vsub.f32 %v1101_v52, %v1105_v0 }
 0x7f8   : > { %v1111_v3 = vmul.f32 1.442695, %v1109_v2 }
 0x7f9   : > { %v1108_v4 = vpop.xlane.xlu1 %1107 }
 0x7fa   : > { %2301 = vpow2.f32 %v1111_v3  ;;  %v1110_v5 = vsub.f32 %v1102_v60, %v1108_v4 }
 0x7fc   : > { %v1113_v6 = vmul.f32 1.442695, %v1110_v5 }
 0x7fd   : > { %v1128_v7 = vpop.permute.xlu1 %1127 }
 0x7fe   : > { %2303 = vpow2.f32 %v1113_v6  ;;  %v1133_v8 = vsel %vm683_vm4, %v1128_v7, 0 }
 0x7ff   : > { %2158 = vmatpush3.bf16.msra.mxu1 %v1133_v8 }
 0x800   : > { %2169 = vmatprep.subr.bf16.mxu1 %v2341_v31 }
 0x801   : > { %v1226_v18 = vpop.permute.xlu1 %1225 }
 0x802   : > { %v1231_v22 = vsel %vm544_vm3, %v1226_v18, 0 }
 0x805   : > { %v1276_v24 = vpop.permute.xlu1 %1275 }
 0x806   : > { %v1281_v26 = vsel %vm544_vm3, %v1276_v24, 0 }
 0x807   : > { %v2302_v9 = vpop.eup %2301 }
 0x808   : > { %v1115_v10 = vsel %vm544_vm3, %v2302_v9, 0.0 }
 0x809   : > { %1116 = vadd.xlane.f32.xlu0 %v1115_v10  ;;  %v1274_v28 = vpop.permute.xlu1 %1273 }
 0x80b   : > { %v2304_v11 = vpop.eup %2303 }
 0x80c   : > { %v1118_v12 = vsel %vm544_vm3, %v2304_v11, 0.0 }
 0x80d   : > { %1119 = vadd.xlane.f32.xlu0 %v1118_v12 }
 0x823   : > { %1175 = vrot.lane.b32.xlu0 %v2489_v44, %s2351_s12 }
 0x827   : > { %1223 = vrot.lane.b32.xlu0 %v2486_v40, %s2353_s11 }
 0x892   : > { %v1117_v13 = vpop.xlane.xlu0 %1116 }
 0x893   : > { %2305 = vrcp.f32 %v1117_v13 }
 0x896   : > { %v1120_v14 = vpop.xlane.xlu0 %1119 }
 0x897   : > { %2307 = vrcp.f32 %v1120_v14 }
 0x89a   : > { %v1176_v15 = vpop.permute.xlu0 %1175 }
 0x89b   : > { %v1181_v16 = vsel %vm683_vm4, %v1176_v15, 0  ;;  %v2277_v15 = vld [vmem:[%s2430_s19 + $0x8] sm:$0xff]  }
 0x89c   : > { %2164 = vmatpush3.bf16.msra.mxu0 %v1181_v16  ;;  %v2278_v16 = vld [vmem:[%s2430_s19] sm:$0xff]  }
 0x89d   : > { %2175 = vmatprep.subr.bf16.mxu0 %v2341_v31 }
 0x89e   : > { %v1224_v27 = vpop.permute.xlu0 %1223 }
 0x8a0   : > { %v2306_v17 = vpop.eup %2305 }
 0x8a1   : > { %v1123_v19 = vmul.f32 %v2306_v17, %v2302_v9 }
 0x8a3   : > { %v1125_v20 = vpack.c.bf16 %v1123_v19, %v1123_v19 }
 0x8a4   : > { %v2308_v21 = vpop.eup %2307 }
 0x8a5   : > { %2160 = vmatmul.mubr.msk.bf16.vlgmr.msra.gmra.mxu1 %vm544_vm3, %v1125_v20  ;;  %v1124_v23 = vmul.f32 %v2308_v21, %v2304_v11 }
 0x8a6   : > { %2170 = vmatpush3.bf16.xpose.msra.mxu1 %v1231_v22  ;;  %2171 = vmatprep.mubr.msk.bf16.mxu1 %vm2342_vm1, %v2341_v31 }
 0x8a7   : > { %v1126_v25 = vpack.c.bf16 %v1124_v23, %v1124_v23  ;;  %2181 = vmatprep.subr.bf16.mxu1 %v2341_v31 }
 0x8a9   : > { %2166 = vmatmul.mubr.msk.bf16.vlgmr.msra.gmra.mxu0 %vm544_vm3, %v1126_v25 }
 0x8aa   : > { %2176 = vmatpush3.bf16.xpose.msra.mxu0 %v1281_v26  ;;  %2177 = vmatprep.mubr.msk.bf16.mxu0 %vm2342_vm1, %v2341_v31 }
 0x8ab   : > { %2187 = vmatprep.subr.bf16.mxu0 %v2341_v31 }
 0x8ad   : > { %2172 = vmatmul.mubr.msk.bf16.vlgmr.msra.gmra.mxu1 %vm544_vm3, %v1224_v27 }
 0x8ae   : > { %2183 = vmatprep.mubr.msk.bf16.mxu1 %vm2342_vm1, %v2341_v31 }
 0x8b1   : > { %2178 = vmatmul.mubr.msk.bf16.vlgmr.msra.gmra.mxu0 %vm544_vm3, %v1274_v28 }
 0x8b2   : > { %2189 = vmatprep.mubr.msk.bf16.mxu0 %vm2342_vm1, %v2341_v31 }
 0x965   : > { %v1169_v29 = vpop.f32.mrf.mxu1 }
 0x967   : > { %v2161_v30 = vpop.f32.mrf.mxu1 }
 0x969   : > { %v1172_v32 = vpop.f32.mrf.mxu1  ;;  %v1217_v35 = vpop.f32.mrf.mxu0 }
 0x96b   : > { %v2162_v37 = vpop.f32.mrf.mxu1  ;;  %v2167_v38 = vpop.f32.mrf.mxu0 }
 0x96d   : > { %v1220_v42 = vpop.f32.mrf.mxu0  ;;  %v1267_v43 = vpop.f32.mrf.mxu1 }
 0x96e   : > { %v1323_v46 = vmul.f32 0.35355338, %v1267_v43 }
 0x96f   : > { %v2168_v47 = vpop.f32.mrf.mxu0  ;;  %v2173_v49 = vpop.f32.mrf.mxu1 }
 0x970   : > { %v1325_v50 = vadd.f32 %v1323_v46, %v2507_v59  ;;  %v2265_v59 = vpack.i.bf16 %v1217_v35, %v1169_v29 }
 0x971   : > { %v1270_v51 = vpop.f32.mrf.mxu1  ;;  %v1317_v52 = vpop.f32.mrf.mxu0 }
 0x972   : > { %v1324_v53 = vmul.f32 0.35355338, %v1317_v52  ;;  %v1327_v54 = vsel %vm544_vm3, %v1325_v50, -inf  ;;  %v2009_v52 = vld [vmem:[%s2445_s29 + $0x2] ss:$0 sm:$0xff] }
 0x973   : > { %1328 = vmax.xlane.f32.xlu0 %v1327_v54  ;;  %v2174_v55 = vpop.f32.mrf.mxu1  ;;  %v2179_v56 = vpop.f32.mrf.mxu0 }
 0x974   : > { %v1326_v57 = vadd.f32 %v1324_v53, %v2510_v1 }
 0x975   : > { %v1320_v58 = vpop.f32.mrf.mxu0 }
 0x976   : > { %v1330_v60 = vsel %vm544_vm3, %v1326_v57, -inf }
 0x977   : > { %1331 = vmax.xlane.f32.xlu1 %v1330_v60  ;;  %v2180_v61 = vpop.f32.mrf.mxu0 }
 0x988   : > { %1351 = vrot.lane.b32.xlu1 %v2486_v40, %s2354_s13 }
 0x98c   : > { %2261 = vrot.lane.b32.xlu1 %v2260_v41, %s2355_s18 }
 0x990   : > { %2266 = vrot.lane.b32.xlu1 %v2265_v59, %s2356_s20 }
 0x9fc   : > { %v1329_v62 = vpop.xlane.xlu0 %1328 }
 0x9fd   : > { %v1333_v63 = vsub.f32 %v1325_v50, %v1329_v62 }
 0x9ff   : > { %v1335_v0 = vmul.f32 1.442695, %v1333_v63 }
 0xa00   : > { %v1332_v1 = vpop.xlane.xlu1 %1331 }
 0xa01   : > { %2309 = vpow2.f32 %v1335_v0  ;;  %v1334_v2 = vsub.f32 %v1326_v57, %v1332_v1 }
 0xa03   : > { %v1337_v3 = vmul.f32 1.442695, %v1334_v2 }
 0xa04   : > { %v1352_v4 = vpop.permute.xlu1 %1351 }
 0xa05   : > { %2311 = vpow2.f32 %v1337_v3  ;;  %v1357_v5 = vsel %vm683_vm4, %v1352_v4, 0 }
 0xa06   : > { %2182 = vmatpush3.bf16.msra.mxu1 %v1357_v5 }
 0xa07   : > { %2193 = vmatprep.subr.bf16.mxu1 %v2341_v31 }
 0xa08   : > { %v2262_v26 = vpop.permute.xlu1 %2261 }
 0xa09   : > { %v2264_v28 = vunpack.i.h.bf16 %v2262_v26  ;;  %v2263_v29 = vunpack.i.l.bf16 %v2262_v26 }
 0xa0b   : > { %v1472_v37 = vsel %vm544_vm3, %v2545_v48, %v2264_v28  ;;  %v1471_v38 = vsel %vm544_vm3, %v2543_v45, %v2263_v29 }
 0xa0c   : > { %v2267_v27 = vpop.permute.xlu1 %2266 }
 0xa0d   : > { %v2269_v30 = vunpack.i.h.bf16 %v2267_v27  ;;  %v2268_v32 = vunpack.i.l.bf16 %v2267_v27 }
 0xa0e   : > { %v2310_v40 = vpop.eup %2309 }
 0xa0f   : > { %v1339_v36 = vsel %vm544_vm3, %v2310_v40, 0.0  ;;  %v1474_v46 = vsel %vm1473_vm5, %v1471_v38, %v2268_v32  ;;  %v1475_v47 = vsel %vm1473_vm5, %v1472_v37, %v2269_v30 }
 0xa10   : > { %1340 = vadd.xlane.f32.xlu0 %v1339_v36 }
 0xa12   : > { %v2312_v39 = vpop.eup %2311 }
 0xa13   : > { %v1342_v41 = vsel %vm544_vm3, %v2312_v39, 0.0 }
 0xa14   : > { %1343 = vadd.xlane.f32.xlu0 %v1342_v41 }
 0xa2a   : > { %1399 = vrot.lane.b32.xlu0 %v2489_v44, %s2354_s13 }
 0xa99   : > { %v1341_v6 = vpop.xlane.xlu0 %1340 }
 0xa9a   : > { %2313 = vrcp.f32 %v1341_v6 }
 0xa9d   : > { %v1344_v7 = vpop.xlane.xlu0 %1343 }
 0xa9e   : > { %2315 = vrcp.f32 %v1344_v7 }
 0xaa1   : > { %v1400_v8 = vpop.permute.xlu0 %1399 }
 0xaa2   : > { %v1405_v9 = vsel %vm683_vm4, %v1400_v8, 0 }
 0xaa3   : > { %2188 = vmatpush3.bf16.msra.mxu0 %v1405_v9 }
 0xaa4   : > { %2201 = vmatprep.subr.bf16.mxu0 %v2341_v31 }
 0xaa7   : > { %v2314_v10 = vpop.eup %2313 }
 0xaa8   : > { %v1347_v11 = vmul.f32 %v2314_v10, %v2310_v40  ;;  %v2280_v40 = vld [vmem:[%s2435_s22] sm:$0xff]  }
 0xaaa   : > { %v1349_v12 = vpack.c.bf16 %v1347_v11, %v1347_v11  ;;  %v2013_v11 = vld [vmem:[%s2445_s29 + $0x3] ss:$0 sm:$0xff] }
 0xaab   : > { %v2316_v13 = vpop.eup %2315 }
 0xaac   : > { %2184 = vmatmul.mubr.msk.bf16.vlgmr.msra.gmra.mxu1 %vm544_vm3, %v1349_v12  ;;  %v1348_v14 = vmul.f32 %v2316_v13, %v2312_v39 }
 0xaad   : > { %2197 = vmatprep.mubr.msk.bf16.mxu1 %vm2342_vm1, %v2341_v31  ;;  %2194 = vmatpush3.bf16.msra.mxu1 %v2277_v15 }
 0xaae   : > { %v1350_v44 = vpack.c.bf16 %v1348_v14, %v1348_v14  ;;  %2195 = vmatprep.subr.bf16.mxu1 %v2341_v31 }
 0xab0   : > { %2190 = vmatmul.mubr.msk.bf16.vlgmr.msra.gmra.mxu0 %vm544_vm3, %v1350_v44  ;;  %v2014_v44 = vld [vmem:[%s2445_s29 + $0x4] ss:$0 sm:$0xff] }
 0xab1   : > { %2205 = vmatprep.mubr.msk.bf16.mxu0 %vm2342_vm1, %v2341_v31  ;;  %2196 = vmatpush3.bf16.msra.mxu1 %v2278_v16 }
 0xab2   : > { %2209 = vmatprep.subr.bf16.mxu1 %v2341_v31 }
 0xb6c   : > { %v1393_v17 = vpop.f32.mrf.mxu1 }
 0xb6e   : > { %v2185_v18 = vpop.f32.mrf.mxu1 }
 0xb70   : > { %v1396_v19 = vpop.f32.mrf.mxu1  ;;  %v1441_v20 = vpop.f32.mrf.mxu0 }
 0xb71   : > { %v2270_v21 = vpack.i.bf16 %v1441_v20, %v1393_v17  ;;  %v2281_v19 = vld [vmem:[%s2440_s25 + $0x18] sm:$0xff]   ;;  %v2282_v20 = vld [vmem:[%s2440_s25 + $0x10] sm:$0xff]  }
 0xb72   : > { %v2186_v22 = vpop.f32.mrf.mxu1  ;;  %v2191_v23 = vpop.f32.mrf.mxu0 }
 0xb73   : > { %2271 = vrot.lane.b32.xlu0 %v2270_v21, %s2357_s16  ;;  %v2283_v21 = vld [vmem:[%s2440_s25 + $0x8] sm:$0xff]   ;;  %v2284_v22 = vld [vmem:[%s2440_s25] sm:$0xff]  }
 0xb74   : > { %v1444_v24 = vpop.f32.mrf.mxu0  ;;  %v2015_v23 = vld [vmem:[%s2445_s29 + $0x1] ss:$0 sm:$0xff] }
 0xb76   : > { %v2192_v25 = vpop.f32.mrf.mxu0 }
 0xbe5   : > { %v2272_v35 = vpop.permute.xlu0 %2271 }
 0xbe6   : > { %v2274_v42 = vunpack.i.h.bf16 %v2272_v35  ;;  %v2273_v43 = vunpack.i.l.bf16 %v2272_v35 }
 0xbe8   : > { %v1478_v49 = vsel %vm1476_vm6, %v1475_v47, %v2274_v42  ;;  %v1477_v50 = vsel %vm1476_vm6, %v1474_v46, %v2273_v43 }
 0xbe9   : > { %v1479_v51 = vpack.c.bf16 %v1478_v49, %v1477_v50 }
 0xbeb   : > { %2198 = vmatmul.mubr.msk.bf16.vlgmr.msra.gmra.mxu1 %vm494_vm2, %v1479_v51 }
 0xbec   : > { %2217 = vmatprep.mubr.msk.bf16.mxu1 %vm2342_vm1, %v2341_v31  ;;  %2210 = vmatpush3.bf16.msra.mxu1 %v2281_v19 }
 0xbed   : > { %2211 = vmatprep.subr.bf16.mxu1 %v2341_v31 }
 0xbf0   : > { %2212 = vmatpush3.bf16.msra.mxu1 %v2282_v20 }
 0xbf1   : > { %2213 = vmatprep.subr.bf16.mxu1 %v2341_v31 }
 0xbf4   : > { %2214 = vmatpush3.bf16.msra.mxu1 %v2283_v21 }
 0xbf5   : > { %2215 = vmatprep.subr.bf16.mxu1 %v2341_v31 }
 0xbf8   : > { %2216 = vmatpush3.bf16.msra.mxu1 %v2284_v22 }
 0xcab   : > { %v1538_v53 = vpop.f32.mrf.mxu1 }
 0xcac   : > { %v1539_v54 = vadd.f32 %v2009_v52, %v1538_v53 }
 0xcad   : > { %v2199_v55 = vpop.f32.mrf.mxu1 }
 0xcae   : > { %v1545_v48 = vadd.f32 %v1539_v54, %v2472_v33 }
 0xcaf   : > { %v1541_v56 = vpop.f32.mrf.mxu1 }
 0xcb0   : > { %v1542_v45 = vadd.f32 %v2009_v52, %v1541_v56  ;;  %v1549_v57 = vsel %vm494_vm2, %v1545_v48, 0.0 }
 0xcb1   : > { %1550 = vadd.xlane.f32.xlu1 %v1549_v57  ;;  %v2200_v58 = vpop.f32.mrf.mxu1 }
 0xcb2   : > { %v1546_v60 = vadd.f32 %v1542_v45, %v2474_v34  ;;  %v2279_v34 = vld [vmem:[%s2435_s22 + $0x8] sm:$0xff]   ;;  %v2019_v45 = vld [vmem:[%s2445_s29 + $0x5] ss:$0 sm:$0xff] }
 0xcb3   : > { %2202 = vmatpush3.bf16.msra.mxu0 %v2279_v34 }
 0xcb4   : > { %v1552_v61 = vsel %vm494_vm2, %v1546_v60, 0.0  ;;  %2203 = vmatprep.subr.bf16.mxu0 %v2341_v31 }
 0xcb5   : > { %1553 = vadd.xlane.f32.xlu0 %v1552_v61 }
 0xcb7   : > { %2204 = vmatpush3.bf16.msra.mxu0 %v2280_v40 }
 0xd3a   : > { %v1551_v59 = vpop.xlane.xlu1 %1550 }
 0xd3b   : > { %v1556_v62 = vmul.f32 0.03125, %v1551_v59 }
 0xd3d   : > { %v1558_v63 = vsub.f32 %v1545_v48, %v1556_v62 }
 0xd3e   : > { %v1554_v0 = vpop.xlane.xlu0 %1553 }
 0xd3f   : > { %v1557_v1 = vmul.f32 0.03125, %v1554_v0  ;;  %v1560_v2 = vmul.f32 %v1558_v63, %v1558_v63 }
 0xd41   : > { %v1559_v33 = vsub.f32 %v1546_v60, %v1557_v1  ;;  %v1562_v3 = vsel %vm494_vm2, %v1560_v2, 0.0 }
 0xd42   : > { %1563 = vadd.xlane.f32.xlu0 %v1562_v3 }
 0xd43   : > { %v1561_v4 = vmul.f32 %v1559_v33, %v1559_v33 }
 0xd45   : > { %v1565_v5 = vsel %vm494_vm2, %v1561_v4, 0.0 }
 0xd46   : > { %1566 = vadd.xlane.f32.xlu1 %v1565_v5 }
 0xdcb   : > { %v1564_v36 = vpop.xlane.xlu0 %1563 }
 0xdcc   : > { %v1568_v39 = vmul.f32 0.03125, %v1564_v36 }
 0xdce   : > { %v1570_v41 = vadd.f32 1e-12, %v1568_v39 }
 0xdcf   : > { %v1567_v6 = vpop.xlane.xlu1 %1566 }
 0xdd0   : > { %2317 = vrsqrt.f32 %v1570_v41  ;;  %v1569_v7 = vmul.f32 0.03125, %v1567_v6 }
 0xdd2   : > { %v1571_v8 = vadd.f32 1e-12, %v1569_v7 }
 0xdd4   : > { %2319 = vrsqrt.f32 %v1571_v8 }
 0xddd   : > { %v2318_v9 = vpop.eup %2317 }
 0xdde   : > { %v1574_v10 = vmul.f32 %v2318_v9, %v1558_v63 }
 0xde0   : > { %v1580_v14 = vmul.f32 %v2013_v11, %v1574_v10 }
 0xde1   : > { %v2320_v12 = vpop.eup %2319 }
 0xde2   : > { %v1575_v13 = vmul.f32 %v2320_v12, %v1559_v33  ;;  %v1586_v16 = vadd.f32 %v2014_v44, %v1580_v14  ;;  %v2025_v14 = vld [vmem:[%s2445_s29 + $0x6] ss:$0 sm:$0xff] }
 0xde4   : > { %v1581_v15 = vmul.f32 %v2013_v11, %v1575_v13 }
 0xde6   : > { %v1587_v17 = vadd.f32 %v2014_v44, %v1581_v15  ;;  %v2026_v15 = vld [vmem:[%s2445_s29 + $0x7] ss:$0 sm:$0xff] }
 0xde8   : > { %v1588_v18 = vpack.c.bf16 %v1587_v17, %v1586_v16 }
 0xdea   : > { %2206 = vmatmul.mubr.msk.bf16.vlgmr.msra.gmra.mxu0 %vm494_vm2, %v1588_v18 }
 0xeaa   : > { %v1647_v24 = vpop.f32.mrf.mxu0 }
 0xeab   : > { %v1648_v25 = vadd.f32 %v2015_v23, %v1647_v24 }
 0xeac   : > { %v2207_v26 = vpop.f32.mrf.mxu0 }
 0xead   : > { %v1654_v27 = vmul.f32 %v1648_v25, %v1648_v25 }
 0xeae   : > { %v1650_v28 = vpop.f32.mrf.mxu0 }
 0xeaf   : > { %v1656_v29 = vmul.f32 %v1654_v27, %v1648_v25  ;;  %v1651_v30 = vadd.f32 %v2015_v23, %v1650_v28 }
 0xeb0   : > { %v2208_v32 = vpop.f32.mrf.mxu0 }
 0xeb1   : > { %v1658_v35 = vmul.f32 0.044715, %v1656_v29  ;;  %v1655_v37 = vmul.f32 %v1651_v30, %v1651_v30 }
 0xeb3   : > { %v1660_v38 = vadd.f32 %v1658_v35, %v1648_v25  ;;  %v1657_v42 = vmul.f32 %v1655_v37, %v1651_v30 }
 0xeb5   : > { %v1662_v43 = vmul.f32 0.7978846, %v1660_v38  ;;  %v1659_v46 = vmul.f32 0.044715, %v1657_v42 }
 0xeb7   : > { %2321 = vtanh.f32 %v1662_v43  ;;  %v1661_v31 = vadd.f32 %v1659_v46, %v1651_v30 }
 0xeb9   : > { %v1663_v47 = vmul.f32 0.7978846, %v1661_v31 }
 0xebb   : > { %2323 = vtanh.f32 %v1663_v47 }
 0xec4   : > { %v2322_v49 = vpop.eup %2321 }
 0xec5   : > { %v1666_v50 = vadd.f32 1.0, %v2322_v49 }
 0xec7   : > { %v1668_v52 = vmul.f32 0.5, %v1666_v50 }
 0xec8   : > { %v2324_v51 = vpop.eup %2323 }
 0xec9   : > { %v1667_v53 = vadd.f32 1.0, %v2324_v51  ;;  %v1670_v55 = vmul.f32 %v1668_v52, %v1648_v25 }
 0xecb   : > { %v1669_v54 = vmul.f32 0.5, %v1667_v53 }
 0xecd   : > { %v1671_v48 = vmul.f32 %v1669_v54, %v1651_v30 }
 0xecf   : > { %v1672_v56 = vpack.c.bf16 %v1671_v48, %v1670_v55 }
 0xed1   : > { %2218 = vmatmul.mubr.msk.bf16.vlgmr.msra.gmra.mxu1 %vm1710_vm7, %v1672_v56 }
 0xf91   : > { %v1748_v57 = vpop.f32.mrf.mxu1 }
 0xf92   : > { %v1749_v58 = vadd.f32 %v2019_v45, %v1748_v57 }
 0xf93   : > { %v2219_v60 = vpop.f32.mrf.mxu1 }
 0xf94   : > { %v1755_v61 = vadd.f32 %v1749_v58, %v1586_v16 }
 0xf95   : > { %v1751_v59 = vpop.f32.mrf.mxu1 }
 0xf96   : > { %v1752_v62 = vadd.f32 %v2019_v45, %v1751_v59  ;;  %v1759_v63 = vsel %vm494_vm2, %v1755_v61, 0.0 }
 0xf97   : > { %1760 = vadd.xlane.f32.xlu0 %v1759_v63  ;;  %v2220_v0 = vpop.f32.mrf.mxu1 }
 0xf98   : > { %v1756_v1 = vadd.f32 %v1752_v62, %v1587_v17 }
 0xf9a   : > { %v1762_v2 = vsel %vm494_vm2, %v1756_v1, 0.0 }
 0xf9b   : > { %1763 = vadd.xlane.f32.xlu1 %v1762_v2 }
0x1020   : > { %v1761_v33 = vpop.xlane.xlu0 %1760 }
0x1021   : > { %v1765_v3 = vmul.f32 0.03125, %v1761_v33 }
0x1023   : > { %v1767_v4 = vsub.f32 %v1755_v61, %v1765_v3 }
0x1024   : > { %v1764_v5 = vpop.xlane.xlu1 %1763 }
0x1025   : > { %v1766_v34 = vmul.f32 0.03125, %v1764_v5  ;;  %v1769_v40 = vmul.f32 %v1767_v4, %v1767_v4 }
0x1027   : > { %v1768_v36 = vsub.f32 %v1756_v1, %v1766_v34  ;;  %v1771_v39 = vsel %vm494_vm2, %v1769_v40, 0.0 }
0x1028   : > { %1772 = vadd.xlane.f32.xlu0 %v1771_v39 }
0x1029   : > { %v1770_v41 = vmul.f32 %v1768_v36, %v1768_v36 }
0x102b   : > { %v1774_v6 = vsel %vm494_vm2, %v1770_v41, 0.0 }
0x102c   : > { %1775 = vadd.xlane.f32.xlu1 %v1774_v6 }
0x10b1   : > { %v1773_v7 = vpop.xlane.xlu0 %1772 }
0x10b2   : > { %v1777_v8 = vmul.f32 0.03125, %v1773_v7 }
0x10b4   : > { %v1779_v9 = vadd.f32 1e-12, %v1777_v8 }
0x10b5   : > { %v1776_v10 = vpop.xlane.xlu1 %1775 }
0x10b6   : > { %2325 = vrsqrt.f32 %v1779_v9  ;;  %v1778_v11 = vmul.f32 0.03125, %v1776_v10 }
0x10b8   : > { %v1780_v12 = vadd.f32 1e-12, %v1778_v11 }
0x10ba   : > { %2327 = vrsqrt.f32 %v1780_v12 }
0x10c3   : > { %v2326_v13 = vpop.eup %2325 }
0x10c4   : > { %v1783_v44 = vmul.f32 %v2326_v13, %v1767_v4 }
0x10c6   : > { %v1789_v16 = vmul.f32 %v2025_v14, %v1783_v44 }
0x10c7   : > { %v2328_v17 = vpop.eup %2327 }
0x10c8   : > { %v1795_v18 = vadd.f32 %v2026_v15, %v1789_v16  ;;  %v1784_v19 = vmul.f32 %v2328_v17, %v1768_v36 }
0x10ca   : > { %1797 = vst.msk [vmem:[#allocation2] sm:$0xff] %vm494_vm2, %v1795_v18  ;;  %v1790_v20 = vmul.f32 %v2025_v14, %v1784_v19  ;;  %1802 = sbr.rel (%p2027_p5) target bundleno = 4665 (0x1239), region = 64 }
0x10cc   : > { %v1796_v21 = vadd.f32 %v2026_v15, %v1790_v20 }
0x10ce   : > { %1798 = vst.msk [vmem:[#allocation2 + $0x8] sm:$0xff] %vm494_vm2, %v1796_v21 }
0x10cf   : > { %v2329_v22 = vld [vmem:[%s2709_s7 + $0x8] sm:$0xff]   ;;  %v1803_v23 = vpack.c.bf16 %v1795_v18, %v1795_v18  ;;  %v1804_v24 = vpack.c.bf16 %v1796_v21, %v1796_v21  ;;  %v2358_v25 = vmov 0.0   ;;  %v2330_v26 = vld [vmem:[%s2709_s7] sm:$0xff]   ;;  %vm2359_vm8 = vmmov 0  }
0x10d0   : > { %2221 = vmatprep.subr.bf16.mxu0 %v2358_v25  ;;  %2225 = vmatprep.mubr.msk.bf16.mxu0 %vm2359_vm8, %v2358_v25  ;;  %vm1819_vm9 = vcmask 1041409   ;;  %v2028_v35 = vld [vmem:[%s2710_s8 + $0x2] ss:$0 sm:$0xff]  ;;  %v2032_v31 = vld [vmem:[%s2710_s8 + $0x3] ss:$0 sm:$0xff]  ;;  %vm1884_vm10 = vcmask 254976  }
0x10d1   : > { %2222 = vmatpush3.bf16.msra.mxu0 %v2329_v22  ;;  %v1816_v27 = vunpack.c.l.b16 %v1803_v23  ;;  %v1817_v28 = vunpack.c.l.b16 %v1804_v24  ;;  %v2033_v51 = vld [vmem:[%s2710_s8 + $0x4] ss:$0 sm:$0xff]  ;;  %vm1894_vm11 = vcmask 1024  }
0x10d2   : > { %2223 = vmatprep.subr.bf16.mxu0 %v2358_v25 }
0x10d3   : > { %v1818_v29 = vrot.slane %v1817_v28, 7 }
0x10d5   : > { %2224 = vmatpush3.bf16.msra.mxu0 %v2330_v26  ;;  %v1820_v30 = vsel %vm1819_vm9, %v1818_v29, %v1816_v27 }
0x10d6   : > { %v1821_v32 = vpack.c.b16 %v1820_v30, %v1820_v30 }
0x10d8   : > { %2226 = vmatmul.mubr.msk.bf16.vlgmr.msra.gmra.mxu0 %vm494_vm2, %v1821_v32 }
0x1198   : > { %v1871_v37 = vpop.f32.mrf.mxu0 }
0x1199   : > { %v1872_v38 = vadd.f32 %v2028_v35, %v1871_v37 }
0x119a   : > { %v2227_v42 = vpop.f32.mrf.mxu0 }
0x119b   : > { %2331 = vtanh.f32 %v1872_v38 }
0x119c   : > { %v1874_v43 = vpop.f32.mrf.mxu0 }
0x119e   : > { %v2228_v46 = vpop.f32.mrf.mxu0 }
0x11a8   : > { %v2332_v47 = vpop.eup %2331 }
0x11a9   : > { %v1883_v49 = vmul.f32 %v2332_v47, %v2032_v31 }
0x11ab   : > { %v1885_v50 = vsel %vm1884_vm10, %v1883_v49, 0.0 }
0x11ac   : > { %1886 = vadd.xlane.f32.xlu0 %v1885_v50 }
0x1235   : > { %v1887_v52 = vpop.xlane.xlu0 %1886 }
0x1236   : > { %v1893_v53 = vadd.f32 %v2033_v51, %v1887_v52 }
0x1238   : > { %1895 = vst.msk [vmem:[%s2711_s9] sm:$0x3] %vm1894_vm11, %v1893_v53 }
0x1239 PF: > { %s19_s30 = sadd.s32 1, %s2339_s30  }
0x123a   : > { %p16_p6 = scmp.ge.s32.totalorder %s19_s30, 4  }
0x123c   :  { %18 = sbr.rel (!%p16_p6) target bundleno = 1 (0x1), region = 102 }

</bundles_post_ra>
